<compile_context>
chip_gen: v7x
topology: tpu7x:2x2x1
jax: 0.10.0
libtpu: 0.0.40
codegen_flags: <defaults>
</compile_context>

<pallas_src>
import jax
import jax.numpy as jnp
from jax.experimental import pallas as pl
from jax.experimental.pallas import tpu as pltpu


# ----------------------------------------------------------------------------
# Pallas kernel
# ----------------------------------------------------------------------------
def _kancd_kernel(
    scal_ref,    # (3,)       SMEM f32: [b_stat, b_diff, b3]
    stu_ref,     # (Bt, Dp)   bf16  student embeddings (zero-padded D)
    exer_ref,    # (Bt, Dp)   bf16  exercise embeddings (zero-padded D)
    edisc_ref,   # (Bt, 1)    f32   raw e_disc embedding
    kn_ref,      # (Bt, Kp)   f32   multi-hot knowledge mask (zero-padded K)
    wa_ref,      # (Dp, Kp)   bf16  (know * w_stat).T, zero-padded
    wb_ref,      # (Dp, Kp)   bf16  (know * w_diff).T, zero-padded
    w1t_ref,     # (Kp, H1p)  f32   |W1|.T
    b1_ref,      # (1, H1p)   f32
    w2t_ref,     # (H1p, H2p) f32   |W2|.T
    b2_ref,      # (1, H2p)   f32
    w3_ref,      # (1, H2p)   f32   |W3|
    out_ref,     # (1, Bt)    f32   lane-dense output row block
):
    f32 = jnp.float32
    b_stat = scal_ref[0]
    b_diff = scal_ref[1]
    b3 = scal_ref[2]

    # GMF heads: two independent MXU dots (bf16 in, f32 accumulate).
    stat = jax.nn.sigmoid(
        jnp.dot(stu_ref[...], wa_ref[...], preferred_element_type=f32) + b_stat
    )                                                  # (Bt, Kp)
    kdiff = jax.nn.sigmoid(
        jnp.dot(exer_ref[...], wb_ref[...], preferred_element_type=f32) + b_diff
    )                                                  # (Bt, Kp)
    e_disc = jax.nn.sigmoid(edisc_ref[...])            # (Bt, 1)

    # input_x = e_disc * (stat - kdiff) * kn_emb   (padded K columns are zeroed
    # by the zero-padded kn mask, so padding stays inert through the prednet).
    x = e_disc * (stat - kdiff) * kn_ref[...]          # (Bt, Kp) f32

    # PosLinear prednet; |W| and transposes pre-computed in the wrapper.
    # TODO(synk): drop_1 / drop_2 are identity in eval mode; training-time
    # dropout masks are not implemented here.
    h1 = jax.nn.sigmoid(
        jnp.dot(x, w1t_ref[...], preferred_element_type=f32) + b1_ref[...]
    )                                                  # (Bt, H1p)
    h2 = jax.nn.sigmoid(
        jnp.dot(h1, w2t_ref[...], preferred_element_type=f32) + b2_ref[...]
    )                                                  # (Bt, H2p)
    # Final layer computed transposed so the store is a lane-dense (1, Bt) row.
    out = jax.nn.sigmoid(
        jnp.dot(w3_ref[...], h2.T, preferred_element_type=f32) + b3
    )                                                  # (1, Bt)
    out_ref[...] = out.astype(out_ref.dtype)


# ----------------------------------------------------------------------------
# Wrapper
# ----------------------------------------------------------------------------
def _round_up(x, m):
    return ((x + m - 1) // m) * m


def _pad_to(x, shape):
    return jnp.pad(x, [(0, s - d) for d, s in zip(x.shape, shape)])


def kancd_forward(params, stu_id, exer_id, kn_emb, *, b_tile=256,
                  compute_dtype=jnp.bfloat16):
    """KaNCD (gmf) forward. b_tile must be a multiple of 128; pick a value
    that yields >=2 grid steps on v7x so both TensorCores get work."""
    assert b_tile % 128 == 0
    f32 = jnp.float32
    lane = 128

    # Glue: embedding lookups (gathers) stay in plain JAX.
    stu_e = params["stu_emb"][stu_id].astype(f32)      # (B, D)
    exer_e = params["exer_emb"][exer_id].astype(f32)   # (B, D)
    e_disc = params["e_disc"][exer_id].astype(f32)     # (B, 1)
    kn = kn_emb.astype(f32)                            # (B, K)

    B, D = stu_e.shape
    know = params["know_emb"].astype(f32)              # (K, D)
    K = know.shape[0]
    H1 = params["w1"].shape[0]
    H2 = params["w2"].shape[0]

    # Lane-aligned padded dims (zero padding is inert; see kernel comment).
    Dp = _round_up(D, lane)
    Kp = _round_up(K, lane)
    H1p = _round_up(H1, lane)
    H2p = _round_up(H2, lane)

    # ---- grid-invariant weight preprocessing (hoisted out of the kernel) ----
    #   stat_pre[b,k]  = sum_d stu[b,d]  * know[k,d] * w_stat[d]
    #   kdiff_pre[b,k] = sum_d exer[b,d] * know[k,d] * w_diff[d]
    wa = _pad_to((know * params["w_stat"][0]).T, (Dp, Kp)).astype(compute_dtype)
    wb = _pad_to((know * params["w_diff"][0]).T, (Dp, Kp)).astype(compute_dtype)

    # PosLinear transform 2*relu(-W)+W == |W|; pre-abs + pre-transpose + pad.
    w1t = _pad_to(jnp.abs(params["w1"]).T, (Kp, H1p))    # (Kp, H1p)
    w2t = _pad_to(jnp.abs(params["w2"]).T, (H1p, H2p))   # (H1p, H2p)
    w3r = _pad_to(jnp.abs(params["w3"]), (1, H2p))       # (1, H2p)
    b1 = _pad_to(params["b1"], (1, H1p))
    b2 = _pad_to(params["b2"], (1, H2p))
    scalars = jnp.array(
        [params["b_stat"][0, 0], params["b_diff"][0, 0], params["b3"][0, 0]],
        dtype=f32)                                        # (3,) -> SMEM

    # ---- per-batch inputs: pad batch to a tile multiple, cast bf16 ----------
    G = pl.cdiv(B, b_tile)
    Bp = G * b_tile
    stu_p = _pad_to(stu_e, (Bp, Dp)).astype(compute_dtype)
    exer_p = _pad_to(exer_e, (Bp, Dp)).astype(compute_dtype)
    kn_p = _pad_to(kn, (Bp, Kp))
    ed_p = _pad_to(e_disc, (Bp, 1))

    # Advisory cost estimate so XLA overlaps the gathers with this call.
    flops = 2 * Bp * (2 * Dp * Kp + Kp * H1p + H1p * H2p + H2p)
    transcendentals = Bp * (2 * Kp + H1p + H2p + 2)
    bytes_accessed = ((stu_p.size + exer_p.size + wa.size + wb.size) * 2 +
                      (kn_p.size + ed_p.size + w1t.size + w2t.size + w3r.size +
                       b1.size + b2.size) * 4 + Bp * 4)

    batch_spec = lambda n: pl.BlockSpec((b_tile, n), lambda i: (i, 0))
    full_spec = lambda shape: pl.BlockSpec(shape, lambda i: (0, 0))

    out = pl.pallas_call(
        _kancd_kernel,
        out_shape=jax.ShapeDtypeStruct((1, Bp), f32),
        grid=(G,),
        in_specs=[
            pl.BlockSpec(memory_space=pltpu.MemorySpace.SMEM),  # scalars
            batch_spec(Dp),                                     # stu
            batch_spec(Dp),                                     # exer
            batch_spec(1),                                      # e_disc
            batch_spec(Kp),                                     # kn mask
            full_spec((Dp, Kp)),                                # (know*w_stat).T
            full_spec((Dp, Kp)),                                # (know*w_diff).T
            full_spec((Kp, H1p)),                               # |W1|.T
            full_spec((1, H1p)),                                # b1
            full_spec((H1p, H2p)),                              # |W2|.T
            full_spec((1, H2p)),                                # b2
            full_spec((1, H2p)),                                # |W3|
        ],
        out_specs=pl.BlockSpec((1, b_tile), lambda i: (0, i)),  # lane-dense
        compiler_params=pltpu.CompilerParams(
            dimension_semantics=("parallel",),
        ),
        cost_estimate=pl.CostEstimate(
            flops=int(flops),
            transcendentals=int(transcendentals),
            bytes_accessed=int(bytes_accessed)),
    )(scalars, stu_p, exer_p, ed_p, kn_p, wa, wb, w1t, b1, w2t, b2, w3r)

    return out.reshape(-1)[:B]                          # matches output_1.view(-1)


# ----------------------------------------------------------------------------
# Pure-JAX reference (for sanity check)
# ----------------------------------------------------------------------------
def kancd_reference(params, stu_id, exer_id, kn_emb):
    stu_e = params["stu_emb"][stu_id]
    exer_e = params["exer_emb"][exer_id]
    e_disc = jax.nn.sigmoid(params["e_disc"][exer_id])
    know = params["know_emb"]

    stat = jax.nn.sigmoid(
        jnp.einsum("bd,kd,d->bk", stu_e, know, params["w_stat"][0])
        + params["b_stat"][0, 0])
    kdiff = jax.nn.sigmoid(
        jnp.einsum("bd,kd,d->bk", exer_e, know, params["w_diff"][0])
        + params["b_diff"][0, 0])
    x = e_disc * (stat - kdiff) * kn_emb.astype(jnp.float32)

    def pos(w):
        return 2.0 * jnp.maximum(-w, 0.0) + w

    h1 = jax.nn.sigmoid(x @ pos(params["w1"]).T + params["b1"][0])
    h2 = jax.nn.sigmoid(h1 @ pos(params["w2"]).T + params["b2"][0])
    out = jax.nn.sigmoid(h2 @ pos(params["w3"]).T + params["b3"][0, 0])
    return out.reshape(-1)


# ----------------------------------------------------------------------------
# Deterministic parameter init (xavier_normal for 'weight'-like params)
# ----------------------------------------------------------------------------
def xavier_normal(key, shape):
    fan_out, fan_in = shape[0], shape[1]
    std = (2.0 / (fan_in + fan_out)) ** 0.5
    return std * jax.random.normal(key, shape, dtype=jnp.float32)


def init_params(key, student_num, exercise_num, knowledge_num, emb_dim,
                hid_dim1, hid_dim2):
    ks = jax.random.split(key, 12)
    return {
        "stu_emb": xavier_normal(ks[0], (student_num, emb_dim)),
        "exer_emb": xavier_normal(ks[1], (exercise_num, emb_dim)),
        "e_disc": xavier_normal(ks[2], (exercise_num, 1)),
        "know_emb": xavier_normal(ks[3], (knowledge_num, emb_dim)),
        # gmf heads
        "w_stat": xavier_normal(ks[4], (1, emb_dim)),
        "b_stat": jnp.zeros((1, 1), jnp.float32),
        "w_diff": xavier_normal(ks[5], (1, emb_dim)),
        "b_diff": jnp.zeros((1, 1), jnp.float32),
        # prednet PosLinear layers
        "w1": xavier_normal(ks[6], (hid_dim1, knowledge_num)),
        "b1": jnp.zeros((1, hid_dim1), jnp.float32),
        "w2": xavier_normal(ks[7], (hid_dim2, hid_dim1)),
        "b2": jnp.zeros((1, hid_dim2), jnp.float32),
        "w3": xavier_normal(ks[8], (1, hid_dim2)),
        "b3": jnp.zeros((1, 1), jnp.float32),
    }


# ----------------------------------------------------------------------------
if __name__ == "__main__":
    # Small shapes consistent with the module.
    STUDENT_NUM = 64
    EXERCISE_NUM = 48
    KNOWLEDGE_NUM = 32
    EMB_DIM = 16
    HID1, HID2 = 64, 32
    BATCH = 200          # padded to 256 internally; 2 "parallel" grid steps

    key = jax.random.PRNGKey(0)
    kp, k1, k2, k3 = jax.random.split(key, 4)

    params = init_params(kp, STUDENT_NUM, EXERCISE_NUM, KNOWLEDGE_NUM,
                         EMB_DIM, HID1, HID2)

    stu_id = jax.random.randint(k1, (BATCH,), 0, STUDENT_NUM, dtype=jnp.int32)
    exer_id = jax.random.randint(k2, (BATCH,), 0, EXERCISE_NUM, dtype=jnp.int32)
    kn_emb = (jax.random.uniform(k3, (BATCH, KNOWLEDGE_NUM)) < 0.3).astype(jnp.float32)

    out = jax.block_until_ready(
        kancd_forward(params, stu_id, exer_id, kn_emb, b_tile=128)
    )
    ref = kancd_reference(params, stu_id, exer_id, kn_emb)

    assert out.shape == (BATCH,)
    # bf16 is only used on the GMF matmul inputs; outputs are sigmoids, so the
    # deviation from the f32 reference is well below this tolerance.
    assert jnp.allclose(out, ref, atol=2e-2, rtol=2e-2)
    print("KERNEL_OK")
</pallas_src>

<mosaic_0001>
module attributes {stable_mosaic.version = 11 : i64} {
  func.func @_kancd_kernel(%arg0: i32, %arg1: memref<3xf32, #tpu.memory_space<smem>>, %arg2: memref<128x128xbf16, #tpu.memory_space<vmem>>, %arg3: memref<128x128xbf16, #tpu.memory_space<vmem>>, %arg4: memref<128x1xf32, #tpu.memory_space<vmem>>, %arg5: memref<128x128xf32, #tpu.memory_space<vmem>>, %arg6: memref<128x128xbf16, #tpu.memory_space<vmem>>, %arg7: memref<128x128xbf16, #tpu.memory_space<vmem>>, %arg8: memref<128x128xf32, #tpu.memory_space<vmem>>, %arg9: memref<1x128xf32, #tpu.memory_space<vmem>>, %arg10: memref<128x128xf32, #tpu.memory_space<vmem>>, %arg11: memref<1x128xf32, #tpu.memory_space<vmem>>, %arg12: memref<1x128xf32, #tpu.memory_space<vmem>>, %arg13: memref<1x128xf32, #tpu.memory_space<vmem>>) attributes {dimension_semantics = [#tpu.dimension_semantics<parallel>], iteration_bounds = array<i64: 2>, scalar_prefetch = 0 : i64, scratch_operands = 0 : i64, tpu.core_type = #tpu.core_type<tc>, window_params = [{transform_indices = @transform_0, window_bounds = array<i64: 3>}, {transform_indices = @transform_1, window_bounds = array<i64: 128, 128>}, {transform_indices = @transform_2, window_bounds = array<i64: 128, 128>}, {transform_indices = @transform_3, window_bounds = array<i64: 128, 1>}, {transform_indices = @transform_4, window_bounds = array<i64: 128, 128>}, {pipeline_mode = #tpu.pipeline_mode<synchronous>, transform_indices = @transform_5, window_bounds = array<i64: 128, 128>}, {pipeline_mode = #tpu.pipeline_mode<synchronous>, transform_indices = @transform_6, window_bounds = array<i64: 128, 128>}, {pipeline_mode = #tpu.pipeline_mode<synchronous>, transform_indices = @transform_7, window_bounds = array<i64: 128, 128>}, {pipeline_mode = #tpu.pipeline_mode<synchronous>, transform_indices = @transform_8, window_bounds = array<i64: 1, 128>}, {pipeline_mode = #tpu.pipeline_mode<synchronous>, transform_indices = @transform_9, window_bounds = array<i64: 128, 128>}, {pipeline_mode = #tpu.pipeline_mode<synchronous>, transform_indices = @transform_10, window_bounds = array<i64: 1, 128>}, {pipeline_mode = #tpu.pipeline_mode<synchronous>, transform_indices = @transform_11, window_bounds = array<i64: 1, 128>}, {transform_indices = @transform_12, window_bounds = array<i64: 1, 128>}]} {
    %c0 = arith.constant 0 : index
    %0 = memref.load %arg1[%c0] : memref<3xf32, #tpu.memory_space<smem>>
    %c1 = arith.constant 1 : index
    %1 = memref.load %arg1[%c1] : memref<3xf32, #tpu.memory_space<smem>>
    %c2 = arith.constant 2 : index
    %2 = memref.load %arg1[%c2] : memref<3xf32, #tpu.memory_space<smem>>
    %c0_0 = arith.constant 0 : index
    %c0_1 = arith.constant 0 : index
    %3 = vector.load %arg2[%c0_0, %c0_1] : memref<128x128xbf16, #tpu.memory_space<vmem>>, vector<128x128xbf16>
    %c0_2 = arith.constant 0 : index
    %c0_3 = arith.constant 0 : index
    %4 = vector.load %arg6[%c0_2, %c0_3] : memref<128x128xbf16, #tpu.memory_space<vmem>>, vector<128x128xbf16>
    %cst = arith.constant dense<0.000000e+00> : vector<128x128xf32>
    %5 = tpu.matmul %3, %4, %cst {dimension_numbers = #tpu.dot_dimension_numbers<[1], [0], [0], [1], [0, 0, 1, 1], [], []>} : vector<128x128xbf16>, vector<128x128xbf16>, vector<128x128xf32> -> vector<128x128xf32>
    %6 = vector.broadcast %0 : f32 to vector<128x128xf32>
    %7 = arith.addf %5, %6 : vector<128x128xf32>
    %8 = arith.negf %7 : vector<128x128xf32>
    %9 = math.exp %8 : vector<128x128xf32>
    %cst_4 = arith.constant 1.000000e+00 : f32
    %10 = vector.broadcast %cst_4 : f32 to vector<128x128xf32>
    %11 = arith.addf %10, %9 : vector<128x128xf32>
    %12 = arith.divf %10, %11 : vector<128x128xf32>
    %c0_5 = arith.constant 0 : index
    %c0_6 = arith.constant 0 : index
    %13 = vector.load %arg3[%c0_5, %c0_6] : memref<128x128xbf16, #tpu.memory_space<vmem>>, vector<128x128xbf16>
    %c0_7 = arith.constant 0 : index
    %c0_8 = arith.constant 0 : index
    %14 = vector.load %arg7[%c0_7, %c0_8] : memref<128x128xbf16, #tpu.memory_space<vmem>>, vector<128x128xbf16>
    %cst_9 = arith.constant dense<0.000000e+00> : vector<128x128xf32>
    %15 = tpu.matmul %13, %14, %cst_9 {dimension_numbers = #tpu.dot_dimension_numbers<[1], [0], [0], [1], [0, 0, 1, 1], [], []>} : vector<128x128xbf16>, vector<128x128xbf16>, vector<128x128xf32> -> vector<128x128xf32>
    %16 = vector.broadcast %1 : f32 to vector<128x128xf32>
    %17 = arith.addf %15, %16 : vector<128x128xf32>
    %18 = arith.negf %17 : vector<128x128xf32>
    %19 = math.exp %18 : vector<128x128xf32>
    %cst_10 = arith.constant 1.000000e+00 : f32
    %20 = vector.broadcast %cst_10 : f32 to vector<128x128xf32>
    %21 = arith.addf %20, %19 : vector<128x128xf32>
    %22 = arith.divf %20, %21 : vector<128x128xf32>
    %c0_11 = arith.constant 0 : index
    %c0_12 = arith.constant 0 : index
    %23 = vector.load %arg4[%c0_11, %c0_12] : memref<128x1xf32, #tpu.memory_space<vmem>>, vector<128x1xf32>
    %24 = arith.negf %23 : vector<128x1xf32>
    %25 = math.exp %24 : vector<128x1xf32>
    %cst_13 = arith.constant 1.000000e+00 : f32
    %26 = vector.broadcast %cst_13 : f32 to vector<128x1xf32>
    %27 = arith.addf %26, %25 : vector<128x1xf32>
    %28 = arith.divf %26, %27 : vector<128x1xf32>
    %29 = arith.subf %12, %22 : vector<128x128xf32>
    %30 = vector.broadcast %28 : vector<128x1xf32> to vector<128x128xf32>
    %31 = arith.mulf %30, %29 : vector<128x128xf32>
    %c0_14 = arith.constant 0 : index
    %c0_15 = arith.constant 0 : index
    %32 = vector.load %arg5[%c0_14, %c0_15] : memref<128x128xf32, #tpu.memory_space<vmem>>, vector<128x128xf32>
    %33 = arith.mulf %31, %32 : vector<128x128xf32>
    %c0_16 = arith.constant 0 : index
    %c0_17 = arith.constant 0 : index
    %34 = vector.load %arg8[%c0_16, %c0_17] : memref<128x128xf32, #tpu.memory_space<vmem>>, vector<128x128xf32>
    %cst_18 = arith.constant dense<0.000000e+00> : vector<128x128xf32>
    %35 = tpu.matmul %33, %34, %cst_18 {dimension_numbers = #tpu.dot_dimension_numbers<[1], [0], [0], [1], [0, 0, 1, 1], [], []>} : vector<128x128xf32>, vector<128x128xf32>, vector<128x128xf32> -> vector<128x128xf32>
    %c0_19 = arith.constant 0 : index
    %c0_20 = arith.constant 0 : index
    %36 = vector.load %arg9[%c0_19, %c0_20] : memref<1x128xf32, #tpu.memory_space<vmem>>, vector<1x128xf32>
    %37 = vector.broadcast %36 : vector<1x128xf32> to vector<128x128xf32>
    %38 = arith.addf %35, %37 : vector<128x128xf32>
    %39 = arith.negf %38 : vector<128x128xf32>
    %40 = math.exp %39 : vector<128x128xf32>
    %cst_21 = arith.constant 1.000000e+00 : f32
    %41 = vector.broadcast %cst_21 : f32 to vector<128x128xf32>
    %42 = arith.addf %41, %40 : vector<128x128xf32>
    %43 = arith.divf %41, %42 : vector<128x128xf32>
    %c0_22 = arith.constant 0 : index
    %c0_23 = arith.constant 0 : index
    %44 = vector.load %arg10[%c0_22, %c0_23] : memref<128x128xf32, #tpu.memory_space<vmem>>, vector<128x128xf32>
    %cst_24 = arith.constant dense<0.000000e+00> : vector<128x128xf32>
    %45 = tpu.matmul %43, %44, %cst_24 {dimension_numbers = #tpu.dot_dimension_numbers<[1], [0], [0], [1], [0, 0, 1, 1], [], []>} : vector<128x128xf32>, vector<128x128xf32>, vector<128x128xf32> -> vector<128x128xf32>
    %c0_25 = arith.constant 0 : index
    %c0_26 = arith.constant 0 : index
    %46 = vector.load %arg11[%c0_25, %c0_26] : memref<1x128xf32, #tpu.memory_space<vmem>>, vector<1x128xf32>
    %47 = vector.broadcast %46 : vector<1x128xf32> to vector<128x128xf32>
    %48 = arith.addf %45, %47 : vector<128x128xf32>
    %49 = arith.negf %48 : vector<128x128xf32>
    %50 = math.exp %49 : vector<128x128xf32>
    %cst_27 = arith.constant 1.000000e+00 : f32
    %51 = vector.broadcast %cst_27 : f32 to vector<128x128xf32>
    %52 = arith.addf %51, %50 : vector<128x128xf32>
    %53 = arith.divf %51, %52 : vector<128x128xf32>
    %c0_28 = arith.constant 0 : index
    %c0_29 = arith.constant 0 : index
    %54 = vector.load %arg12[%c0_28, %c0_29] : memref<1x128xf32, #tpu.memory_space<vmem>>, vector<1x128xf32>
    %55 = tpu.transpose %53, [1, 0] : vector<128x128xf32> -> vector<128x128xf32>
    %cst_30 = arith.constant dense<0.000000e+00> : vector<1x128xf32>
    %56 = tpu.matmul %54, %55, %cst_30 {dimension_numbers = #tpu.dot_dimension_numbers<[1], [0], [0], [1], [0, 0, 1, 1], [], []>} : vector<1x128xf32>, vector<128x128xf32>, vector<1x128xf32> -> vector<1x128xf32>
    %57 = vector.broadcast %2 : f32 to vector<1x128xf32>
    %58 = arith.addf %56, %57 : vector<1x128xf32>
    %59 = arith.negf %58 : vector<1x128xf32>
    %60 = math.exp %59 : vector<1x128xf32>
    %cst_31 = arith.constant 1.000000e+00 : f32
    %61 = vector.broadcast %cst_31 : f32 to vector<1x128xf32>
    %62 = arith.addf %61, %60 : vector<1x128xf32>
    %63 = arith.divf %61, %62 : vector<1x128xf32>
    %c0_32 = arith.constant 0 : index
    %c0_33 = arith.constant 0 : index
    %64 = vector.load %arg13[%c0_32, %c0_33] : memref<1x128xf32, #tpu.memory_space<vmem>>, vector<1x128xf32>
    tpu.vector_store %arg13[%c0_32, %c0_33], %63 {strides = array<i32>} : memref<1x128xf32, #tpu.memory_space<vmem>>, vector<1x128xf32>,
    return
  }
  func.func @transform_0(%arg0: i32) -> i32 {
    %c0_i32 = arith.constant 0 : i32
    %c0_i32_0 = arith.constant 0 : i32
    return %c0_i32 : i32
  }
  func.func @transform_1(%arg0: i32) -> (i32, i32) {
    %c0_i32 = arith.constant 0 : i32
    %c0_i32_0 = arith.constant 0 : i32
    return %arg0, %c0_i32 : i32, i32
  }
  func.func @transform_2(%arg0: i32) -> (i32, i32) {
    %c0_i32 = arith.constant 0 : i32
    %c0_i32_0 = arith.constant 0 : i32
    return %arg0, %c0_i32 : i32, i32
  }
  func.func @transform_3(%arg0: i32) -> (i32, i32) {
    %c0_i32 = arith.constant 0 : i32
    %c0_i32_0 = arith.constant 0 : i32
    return %arg0, %c0_i32 : i32, i32
  }
  func.func @transform_4(%arg0: i32) -> (i32, i32) {
    %c0_i32 = arith.constant 0 : i32
    %c0_i32_0 = arith.constant 0 : i32
    return %arg0, %c0_i32 : i32, i32
  }
  func.func @transform_5(%arg0: i32) -> (i32, i32) {
    %c0_i32 = arith.constant 0 : i32
    %c0_i32_0 = arith.constant 0 : i32
    %c0_i32_1 = arith.constant 0 : i32
    return %c0_i32, %c0_i32_0 : i32, i32
  }
  func.func @transform_6(%arg0: i32) -> (i32, i32) {
    %c0_i32 = arith.constant 0 : i32
    %c0_i32_0 = arith.constant 0 : i32
    %c0_i32_1 = arith.constant 0 : i32
    return %c0_i32, %c0_i32_0 : i32, i32
  }
  func.func @transform_7(%arg0: i32) -> (i32, i32) {
    %c0_i32 = arith.constant 0 : i32
    %c0_i32_0 = arith.constant 0 : i32
    %c0_i32_1 = arith.constant 0 : i32
    return %c0_i32, %c0_i32_0 : i32, i32
  }
  func.func @transform_8(%arg0: i32) -> (i32, i32) {
    %c0_i32 = arith.constant 0 : i32
    %c0_i32_0 = arith.constant 0 : i32
    %c0_i32_1 = arith.constant 0 : i32
    return %c0_i32, %c0_i32_0 : i32, i32
  }
  func.func @transform_9(%arg0: i32) -> (i32, i32) {
    %c0_i32 = arith.constant 0 : i32
    %c0_i32_0 = arith.constant 0 : i32
    %c0_i32_1 = arith.constant 0 : i32
    return %c0_i32, %c0_i32_0 : i32, i32
  }
  func.func @transform_10(%arg0: i32) -> (i32, i32) {
    %c0_i32 = arith.constant 0 : i32
    %c0_i32_0 = arith.constant 0 : i32
    %c0_i32_1 = arith.constant 0 : i32
    return %c0_i32, %c0_i32_0 : i32, i32
  }
  func.func @transform_11(%arg0: i32) -> (i32, i32) {
    %c0_i32 = arith.constant 0 : i32
    %c0_i32_0 = arith.constant 0 : i32
    %c0_i32_1 = arith.constant 0 : i32
    return %c0_i32, %c0_i32_0 : i32, i32
  }
  func.func @transform_12(%arg0: i32) -> (i32, i32) {
    %c0_i32 = arith.constant 0 : i32
    %c0_i32_0 = arith.constant 0 : i32
    return %c0_i32, %arg0 : i32, i32
  }
}

</mosaic_0001>

<bundles_post_ra>
// kernel: tpu_custom_call.1
= control target key start
LH: loop header
LB: loop body
LE: loop exit
PB: predicated region body
PF: predicated region fallthrough
CT: control target
= control target key end

     0   :  { %s4231_s0 = inlined_call_operand.vmem [shape: f32[3], index: 0, kind: input, shape index: {}]   ;;  %s4232_s1 = inlined_call_operand.hbm [shape: bf16[256,128], index: 1, kind: input, shape index: {}]   ;;  %s4233_s2 = inlined_call_operand.hbm [shape: bf16[256,128], index: 2, kind: input, shape index: {}]   ;;  %s4234_s3 = inlined_call_operand.vmem [shape: f32[256,1], index: 3, kind: input, shape index: {}]   ;;  %s4235_s4 = inlined_call_operand.vmem [shape: f32[256,128], index: 4, kind: input, shape index: {}]   ;;  %s4236_s5 = inlined_call_operand.hbm [shape: bf16[128,128], index: 5, kind: input, shape index: {}]   ;;  %s4237_s6 = inlined_call_operand.hbm [shape: bf16[128,128], index: 6, kind: input, shape index: {}]   ;;  %s4238_s7 = inlined_call_operand.hbm [shape: f32[128,128], index: 7, kind: input, shape index: {}]   ;;  %s4239_s8 = inlined_call_operand.vmem [shape: f32[1,128], index: 8, kind: input, shape index: {}]   ;;  %s4240_s9 = inlined_call_operand.hbm [shape: f32[128,128], index: 9, kind: input, shape index: {}]   ;;  %s4241_s10 = inlined_call_operand.vmem [shape: f32[1,128], index: 10, kind: input, shape index: {}]   ;;  %s4242_s11 = inlined_call_operand.vmem [shape: f32[1,128], index: 11, kind: input, shape index: {}]   ;;  %s4243_s12 = inlined_call_operand.hbm [shape: f32[1,256], index: 12, kind: output, shape index: {}]  }
   0x1   :  { %4253 = sst [smem:[#allocation25_spill]] %s4231_s0 }
   0x2   :  { %4254 = sst [smem:[#allocation26_spill]] %s4232_s1 }
   0x3   :  { %4255 = sst [smem:[#allocation27_spill]] %s4236_s5 }
   0x4   :  { %4256 = sst [smem:[#allocation28_spill]] %s4237_s6 }
   0x5   :  { %4257 = sst [smem:[#allocation29_spill]] %s4238_s7 }
   0x6   :  { %4258 = sst [smem:[#allocation30_spill]] %s4240_s9 }
   0x7   :  { %4259 = sst [smem:[#allocation31_spill]] %s4241_s10 }
   0x8   :  { %4260 = sst [smem:[#allocation32_spill]] %s4242_s11 }
   0x9   :  { %4261 = sst [smem:[#allocation33_spill]] %s4243_s12 }
   0xa   :  { %17 = vsyncpa [#allocation5], 0 }
   0xb   :  { %18 = vsyncpa [#allocation3], 0 }
   0xc   :  { %20 = vsyncpa [#allocation3 + $0x1], 0 }
   0xd   :  { %21 = vsyncpa [#allocation8], 0 }
   0xe   :  { %23 = vsyncpa [#allocation8 + $0x1], 0 }
   0xf   :  { %24 = vsyncpa [#allocation11], 0 }
  0x10   :  { %25 = vsyncpa [#allocation14], 0 }
  0x11   :  { %26 = vsyncpa [#allocation4], 0 }
  0x12   :  { %28 = vsyncpa [#allocation4 + $0x1], 0  ;;  %s3660_s21 = smov 0   ;;  %s3662_s22 = smov 0  }
  0x13   :  { %s3664_s23 = smov 0   ;;  %s3666_s24 = smov 0  }
  0x14 LB: > { %4262 = sst [smem:[#allocation23_spill]] %s3573_s23  ;;  %s3579_s25 = smov [#allocation9]   ;;  %s3577_s24 = sphi %s3666_s24, %s4299_s24   ;;  %s3573_s23 = sphi %s3664_s23, %s4296_s23   ;;  %s3569_s22 = sphi %s3662_s22, %s4298_s22   ;;  %s3565_s21 = sphi %s3660_s21, %s4297_s21  }
  0x15   : > { %s360_s26 = sshll.u32 %s3579_s25, 4  ;;  %s3681_s27 = sadd.s32 4294967295, %s3577_s24   ;;  %s3686_s26 = int_to_ptr.vmem [resolvable:$true] %s360_s26 }
  0x16   : > { %p2277_p0 = scmp.ge.s32.totalorder %s3577_s24, 1  ;;  %p4245_p1 = scmp.eq.s32.totalorder %s3681_s27, 0 }
  0x17   : > { %p337_p2 = scmp.lt.s32.totalorder %s3577_s24, 3  ;;  %s3580_s29 = smov [#allocation10]  }
  0x18   : > { %s373_s30 = sshll.u32 %s3580_s29, 4  ;;  %s4264_s0 = sld [smem:[#allocation25_spill]]  ;;  %s3704_s30 = int_to_ptr.vmem [resolvable:$true] %s373_s30 }
  0x19   : > { %p3688_p3 = pnand %p2277_p0, %p337_p2  ;;  %s4266_s5 = sld [smem:[#allocation27_spill]] }
  0x1b   : > { %s4263_s28 = scalar_select %p3688_p3, 1, 0 }
  0x1c   : > { %p2862_p5 = pneg %p3688_p3 }
  0x1e   : > { %s350_s15 = sshll.u32 %s4264_s0, 4  ;;  %p3700_p6 = pnand %p2862_p5, %p4245_p1  ;;  %s3706_s15 = int_to_ptr.vmem [resolvable:$true] %s350_s15 }
  0x1f   : > { %s3304_s19 = scalar_lea.hbm %s4266_s5, 1024 }
  0x20   : > { %p3305_p7 = scmp.ne.s32.totalorder %s4266_s5, %s3304_s19  ;;  %p3716_p8 = pneg %p3700_p6 }
  0x21   : > { %p3311_p11 = scmp.lt.u32.totalorder %s3304_s19, %s4266_s5 }
  0x22   : > { %p3307_p9 = pnand %p3716_p8, %p3305_p7 }
  0x24   : > { %p3308_p10 = pneg %p3307_p9 }
  0x26   : > { %p3313_p12 = pnand %p3311_p11, %p3308_p10 }
  0x28   : > { %3316 = shalt.err (!%p3313_p12)
}
  0x29   : > { %s3317_s17 = scalar_lea.vmem %s3686_s26, 1024  ;;  %p3325_p5 = scmp.lt.s32.totalorder %s3686_s26, %s3686_s26 }
  0x2a   : > { %p3318_p13 = scmp.ne.s32.totalorder %s3686_s26, %s3317_s17  ;;  %p3326_p4 = scmp.lt.s32.totalorder %s3317_s17, %s3317_s17 }
  0x2c   : > { %p3320_p0 = pnand %p3318_p13, %p3716_p8  ;;  %p3327_p7 = por %p3326_p4, %p3325_p5 }
  0x2e   : > { %p3321_p2 = pneg %p3320_p0 }
  0x30   : > { %p3328_p9 = pnand %p3327_p7, %p3321_p2 }
  0x32   : > { %3331 = shalt.err (!%p3328_p9)
}
  0x33   : > { %s4247_s18 = smov 64   ;;  %s4249_s19 = smov 4  }
  0x34   : > { %2868 = dma.hbm_to_vmem [thread:$0]  (!%p3700_p6), %s4266_s5, 1024, %s3686_s26, [#allocation8], %s4247_s18, %s4247_s18, %s4249_s19  }
  0x35   : > { %s4268_s6 = sld [smem:[#allocation28_spill]] }
  0x3b   : > { %s3332_s17 = scalar_lea.hbm %s4268_s6, 1024 }
  0x3c   : > { %p3333_p4 = scmp.ne.s32.totalorder %s4268_s6, %s3332_s17  ;;  %p3339_p12 = scmp.lt.u32.totalorder %s3332_s17, %s4268_s6 }
  0x3e   : > { %p3335_p10 = pnand %p3333_p4, %p3716_p8 }
  0x40   : > { %p3336_p11 = pneg %p3335_p10 }
  0x42   : > { %p3341_p13 = pnand %p3339_p12, %p3336_p11 }
  0x44   : > { %3344 = shalt.err (!%p3341_p13)
}
  0x45   : > { %s3345_s26 = scalar_lea.vmem %s3704_s30, 1024  ;;  %p3353_p7 = scmp.lt.s32.totalorder %s3704_s30, %s3704_s30 }
  0x46   : > { %p3346_p0 = scmp.ne.s32.totalorder %s3704_s30, %s3345_s26  ;;  %p3354_p9 = scmp.lt.s32.totalorder %s3345_s26, %s3345_s26 }
  0x48   : > { %p3348_p2 = pnand %p3346_p0, %p3716_p8  ;;  %p3355_p4 = por %p3354_p9, %p3353_p7 }
  0x4a   : > { %p3349_p5 = pneg %p3348_p2 }
  0x4c   : > { %p3356_p10 = pnand %p3355_p4, %p3349_p5 }
  0x4e   : > { %3359 = shalt.err (!%p3356_p10)
}
  0x4f   : > { %2871 = dma.hbm_to_vmem [thread:$0]  (!%p3700_p6), %s4268_s6, 1024, %s3704_s30, [#allocation11], %s4247_s18, %s4247_s18, %s4249_s19  }
  0x50   : > { %s3360_s11 = scalar_lea.vmem %s3706_s15, 16  ;;  %p3368_p0 = scmp.lt.s32.totalorder %s3706_s15, %s3706_s15 }
  0x51   : > { %p3361_p11 = scmp.ne.s32.totalorder %s3706_s15, %s3360_s11  ;;  %p3369_p2 = scmp.lt.s32.totalorder %s3360_s11, %s3360_s11 }
  0x53   : > { %p3363_p12 = pnand %p3361_p11, %p3716_p8  ;;  %p3370_p5 = por %p3369_p2, %p3368_p0 }
  0x55   : > { %p3364_p13 = pneg %p3363_p12 }
  0x57   : > { %p3371_p7 = pnand %p3370_p5, %p3364_p13 }
  0x59   : > { %3374 = shalt.err (!%p3371_p7)
}
  0x5a   : > { %s3583_s12 = smov [#allocation2]   ;;  %s3584_s20 = smov [#allocation12]  }
  0x5b   : > { %2865 = dma.vmem_to_smem (!%p3700_p6), %s3706_s15, 16, %s3583_s12, [#allocation5]  }
  0x5c   : > { %s386_s25 = sshll.u32 %s3584_s20, 4  ;;  %s4269_s7 = sld [smem:[#allocation29_spill]]  ;;  %s387_s25 = int_to_ptr.vmem [resolvable:$true] %s386_s25 }
  0x62   : > { %s3375_s14 = scalar_lea.hbm %s4269_s7, 2048 }
  0x63   : > { %p3376_p9 = scmp.ne.s32.totalorder %s4269_s7, %s3375_s14  ;;  %p3382_p11 = scmp.lt.u32.totalorder %s3375_s14, %s4269_s7 }
  0x65   : > { %p3378_p4 = pnand %p3376_p9, %p3716_p8 }
  0x67   : > { %p3379_p10 = pneg %p3378_p4 }
  0x69   : > { %p3384_p12 = pnand %p3382_p11, %p3379_p10 }
  0x6b   : > { %3387 = shalt.err (!%p3384_p12)
}
  0x6c   : > { %s3388_s15 = scalar_lea.vmem %s387_s25, 2048  ;;  %p3396_p5 = scmp.lt.s32.totalorder %s387_s25, %s387_s25 }
  0x6d   : > { %p3389_p13 = scmp.ne.s32.totalorder %s387_s25, %s3388_s15  ;;  %p3397_p7 = scmp.lt.s32.totalorder %s3388_s15, %s3388_s15 }
  0x6f   : > { %p3391_p0 = pnand %p3389_p13, %p3716_p8  ;;  %p3398_p1 = por %p3397_p7, %p3396_p5 }
  0x71   : > { %p3392_p2 = pneg %p3391_p0 }
  0x73   : > { %p3399_p3 = pnand %p3398_p1, %p3392_p2 }
  0x75   : > { %3402 = shalt.err (!%p3399_p3)
}
  0x76   : > { %s3585_s11 = smov 128   ;;  %s3586_s12 = smov 8  }
  0x77   : > { %2874 = dma.hbm_to_vmem [thread:$0]  (!%p3700_p6), %s4269_s7, 2048, %s387_s25, [#allocation11], %s3585_s11, %s3585_s11, %s3586_s12  }
  0x78   : > { %s3587_s13 = smov [#allocation13]   ;;  %s4270_s9 = sld [smem:[#allocation30_spill]] }
  0x79   : > { %s402_s14 = sshll.u32 %s3587_s13, 4  ;;  %s403_s14 = int_to_ptr.vmem [resolvable:$true] %s402_s14 }
  0x7e   : > { %s3403_s0 = scalar_lea.hbm %s4270_s9, 2048 }
  0x7f   : > { %p3404_p1 = scmp.ne.s32.totalorder %s4270_s9, %s3403_s0  ;;  %p3410_p4 = scmp.lt.u32.totalorder %s3403_s0, %s4270_s9 }
  0x81   : > { %p3406_p3 = pnand %p3404_p1, %p3716_p8 }
  0x83   : > { %p3407_p9 = pneg %p3406_p3 }
  0x85   : > { %p3412_p10 = pnand %p3410_p4, %p3407_p9 }
  0x87   : > { %3415 = shalt.err (!%p3412_p10)
}
  0x88   : > { %s3416_s25 = scalar_lea.vmem %s403_s14, 2048  ;;  %p3424_p0 = scmp.lt.s32.totalorder %s403_s14, %s403_s14 }
  0x89   : > { %p3417_p11 = scmp.ne.s32.totalorder %s403_s14, %s3416_s25  ;;  %p3425_p2 = scmp.lt.s32.totalorder %s3416_s25, %s3416_s25 }
  0x8b   : > { %p3419_p12 = pnand %p3417_p11, %p3716_p8  ;;  %p3426_p5 = por %p3425_p2, %p3424_p0 }
  0x8d   : > { %p3420_p13 = pneg %p3419_p12 }
  0x8f   : > { %p3427_p7 = pnand %p3426_p5, %p3420_p13 }
  0x91   : > { %3430 = shalt.err (!%p3427_p7)
}
  0x92   : > { %2877 = dma.hbm_to_vmem [thread:$0]  (!%p3700_p6), %s4270_s9, 2048, %s403_s14, [#allocation14], %s3585_s11, %s3585_s11, %s3586_s12  }
  0x93   : > { %s2276_s29 = sadd.s32 4294967294, %s3577_s24   ;;  %s3813_s16 = sadd.s32 1, %s3577_s24  }
  0x94   : > { %s62_s18 = sadd.s32 1, %s3573_s23  ;;  %s59_s19 = ssub.s32 %s3577_s24, %s3813_s16 }
  0x95   : > { %p69_p8 = scmp.ne.s32.totalorder %s3573_s23, %s3569_s22  ;;  %p60_p1 = scmp.eq.s32.totalorder %s59_s19, 0 }
  0x96   : > { %p70_p3 = scmp.eq.s32.totalorder %s3577_s24, 0  ;;  %p75_p9 = scmp.ne.s32.totalorder %s3569_s22, %s3565_s21 }
  0x97   : > { %p324_p4 = scmp.eq.s32.totalorder %s3681_s27, 1  ;;  %p4272_p11 = scmp.eq.s32.totalorder %s3681_s27, 0 }
  0x98   : > { %s3825_s13 = scalar_select %p60_p1, %s3573_s23, %s62_s18  }
  0x99   : > { %p71_p10 = por %p70_p3, %p69_p8  ;;  %p3829_p12 = por %p4272_p11, %p75_p9 }
  0x9a   : > { %4271 = sst [smem:[#allocation24_spill]] %s3825_s13  ;;  %p3833_p6 = por %p324_p4, %p69_p8 }
  0x9b   : > { %p330_p13 = scmp.eq.s32.totalorder %s2276_s29, 1  ;;  %p2894_p0 = scmp.lt.s32.totalorder %s3577_s24, 2 }
  0x9c   : > { %s4274_s11 = scalar_select %p3833_p6, 1, 0 }
  0x9d   : > { %s422_s12 = sand.u32 1, %s3573_s23   ;;  %p3839_p2 = por %p330_p13, %p75_p9 }
  0x9e   : > { %s3843_s26 = sshll.u32 %s422_s12, 6  ;;  %s2422_s0 = sshll.u32 %s3577_s24, 10 }
  0x9f   : > { %s4275_s14 = scalar_select %p3839_p2, 1, 0 }
  0xa0   : > { %s4276_s1 = sld [smem:[#allocation26_spill]]  ;;  %s426_s20 = scalar_lea.vmem [#allocation6], %s3843_s26 }
  0xa1   : > { %s433_s30 = sshll.u32 %s426_s20, 4  ;;  %p3852_p5 = pnand %p2894_p0, %p71_p10  ;;  %s3856_s30 = int_to_ptr.vmem [resolvable:$true] %s433_s30 }
  0xa2   : > { %s3861_s10 = scalar_lea.hbm %s4233_s2, %s2422_s0  ;;  %s3863_s15 = scalar_lea.sflag [#allocation3], %s422_s12 }
  0xa3   : > { %p3433_p8 = pneg %p3852_p5 }
  0xa6   : > { %s3849_s25 = scalar_lea.hbm %s4276_s1, %s2422_s0  ;;  %s3436_s7 = scalar_lea.hbm %s4276_s1, 2048 }
  0xa7   : > { %s3431_s5 = scalar_lea.hbm %s3849_s25, 1024  ;;  %p3437_p9 = scmp.lt.u32.totalorder %s3849_s25, %s4276_s1 }
  0xa8   : > { %p3432_p7 = scmp.ne.s32.totalorder %s3849_s25, %s3431_s5  ;;  %p3438_p4 = scmp.lt.u32.totalorder %s3436_s7, %s3431_s5 }
  0xa9   : > { %p3440_p11 = scmp.lt.u32.totalorder %s3431_s5, %s3849_s25 }
  0xaa   : > { %p3434_p1 = pnand %p3433_p8, %p3432_p7  ;;  %p3439_p10 = por %p3438_p4, %p3437_p9 }
  0xac   : > { %p3435_p3 = pneg %p3434_p1  ;;  %p3441_p13 = por %p3440_p11, %p3439_p10 }
  0xae   : > { %p3442_p0 = pnand %p3441_p13, %p3435_p3 }
  0xb0   : > { %3445 = shalt.err (!%p3442_p0)
}
  0xb1   : > { %s3446_s12 = scalar_lea.vmem %s3856_s30, 1024  ;;  %s3588_s6 = smov [#allocation6]  }
  0xb2   : > { %p3447_p7 = scmp.ne.s32.totalorder %s3856_s30, %s3446_s12  ;;  %s3451_s0 = sshll.u32 %s3588_s6, 4  ;;  %s3452_s0 = int_to_ptr.vmem [resolvable:$false] %s3451_s0 }
  0xb3   : > { %s3453_s9 = scalar_lea.vmem %s3452_s0, 2048  ;;  %p3454_p6 = scmp.lt.s32.totalorder %s3856_s30, %s3452_s0 }
  0xb4   : > { %p3449_p1 = pnand %p3447_p7, %p3433_p8  ;;  %p3455_p9 = scmp.lt.s32.totalorder %s3453_s9, %s3446_s12 }
  0xb6   : > { %p3450_p2 = pneg %p3449_p1  ;;  %p3456_p4 = por %p3455_p9, %p3454_p6 }
  0xb8   : > { %p3457_p10 = pnand %p3456_p4, %p3450_p2 }
  0xba   : > { %3460 = shalt.err (!%p3457_p10)
}
  0xbb   : > { %s4278_s5 = smov 4   ;;  %s4279_s7 = smov 64  }
  0xbc   : > { %2881 = dma.hbm_to_vmem [thread:$0]  (!%p3852_p5), %s3849_s25, 1024, %s3856_s30, %s3863_s15, %s4279_s7, %s4279_s7, %s4278_s5  }
  0xbd   : > { %s447_s13 = scalar_lea.vmem [#allocation7], %s3843_s26  ;;  %s443_s19 = sand.u32 1, %s3577_s24  }
  0xbe   : > { %s454_s18 = sshll.u32 %s447_s13, 4  ;;  %s3898_s20 = scalar_lea.sflag [#allocation8], %s443_s19  ;;  %s3896_s18 = int_to_ptr.vmem [resolvable:$true] %s454_s18 }
  0xbf   : > { %s3461_s12 = scalar_lea.hbm %s3861_s10, 1024  ;;  %s3466_s9 = scalar_lea.hbm %s4233_s2, 2048 }
  0xc0   : > { %p3462_p6 = scmp.ne.s32.totalorder %s3861_s10, %s3461_s12  ;;  %p3467_p11 = scmp.lt.u32.totalorder %s3861_s10, %s4233_s2 }
  0xc1   : > { %p3468_p13 = scmp.lt.u32.totalorder %s3466_s9, %s3461_s12  ;;  %p3470_p7 = scmp.lt.u32.totalorder %s3461_s12, %s3861_s10 }
  0xc2   : > { %p3464_p2 = pnand %p3462_p6, %p3433_p8 }
  0xc3   : > { %p3469_p0 = por %p3468_p13, %p3467_p11 }
  0xc4   : > { %p3465_p3 = pneg %p3464_p2 }
  0xc5   : > { %p3471_p1 = por %p3470_p7, %p3469_p0 }
  0xc7   : > { %p3472_p9 = pnand %p3471_p1, %p3465_p3 }
  0xc9   : > { %3475 = shalt.err (!%p3472_p9)
}
  0xca   : > { %s3476_s26 = scalar_lea.vmem %s3896_s18, 1024  ;;  %s3589_s25 = smov [#allocation7]  }
  0xcb   : > { %p3477_p4 = scmp.ne.s32.totalorder %s3896_s18, %s3476_s26  ;;  %s3481_s30 = sshll.u32 %s3589_s25, 4  ;;  %s3482_s30 = int_to_ptr.vmem [resolvable:$false] %s3481_s30 }
  0xcc   : > { %s3483_s1 = scalar_lea.vmem %s3482_s30, 2048  ;;  %p3484_p2 = scmp.lt.s32.totalorder %s3896_s18, %s3482_s30 }
  0xcd   : > { %p3479_p10 = pnand %p3477_p4, %p3433_p8  ;;  %p3485_p11 = scmp.lt.s32.totalorder %s3483_s1, %s3476_s26 }
  0xcf   : > { %p3480_p6 = pneg %p3479_p10  ;;  %p3486_p13 = por %p3485_p11, %p3484_p2 }
  0xd1   : > { %p3487_p0 = pnand %p3486_p13, %p3480_p6 }
  0xd3   : > { %3490 = shalt.err (!%p3487_p0)
}
  0xd4   : > { %2884 = dma.hbm_to_vmem [thread:$0]  (!%p3852_p5), %s3861_s10, 1024, %s3896_s18, %s3898_s20, %s4279_s7, %s4279_s7, %s4278_s5  }
  0xd5   : > { %p4280_p8 = scmp.ne.s32.totalorder %s4263_s28, 0 }
  0xd6   : > { %p4281_p3 = scmp.eq.s32.totalorder (!%p4280_p8), %s3681_s27, 0 }
  0xd7   : > { %484 = sbr.rel (%p4280_p8) target bundleno = 1358 (0x54e), region = 68 }
  0xde   : > { %3536 = dma.done.wait (%p4281_p3), [#allocation5], 16   ;;  %p4282_p7 = pmov %p4281_p3 }
  0xdf   : > { %s3934_s23 = sand.u32 1, %s3569_s22  }
  0xe0   : > { %3538 = vsyncadd (%p4282_p7), [#allocation5], 4294967280  ;;  %s2292_s29 = sshll.u32 %s3934_s23, 6  ;;  %s491_s15 = scalar_lea.sflag [#allocation3], %s3934_s23 }
  0xe1   : > { %s3938_s13 = scalar_lea.vmem [#allocation6], %s2292_s29 }
  0xe2   : > { %3540 = dma.done.wait (%p3829_p12), %s491_s15, 1024  }
  0xe3   : > { %3542 = vsyncadd (%p3829_p12), %s491_s15, 4294966272  ;;  %s499_s28 = sand.u32 1, %s3681_s27   ;;  %s3945_s5 = scalar_lea.vmem [#allocation7], %s2292_s29 }
  0xe4   : > { %s500_s10 = scalar_lea.sflag [#allocation8], %s499_s28 }
  0xe5   : > { %3544 = dma.done.wait (%p3829_p12), %s500_s10, 1024  }
  0xe6   : > { %3546 = vsyncadd (%p3829_p12), %s500_s10, 4294966272  ;;  %p4283_p5 = pmov %p4281_p3 }
  0xe7   : > { %p4284_p1 = pmov %p4281_p3 }
  0xe8   : > { %3548 = dma.done.wait (%p4283_p5), [#allocation8], 1024  }
  0xe9   : > { %3550 = vsyncadd (%p4284_p1), [#allocation8], 4294966272  ;;  %p4285_p9 = pmov %p4284_p1 }
  0xea   : > { %p4286_p4 = pmov %p4284_p1 }
  0xeb   : > { %3552 = dma.done.wait (%p4285_p9), [#allocation11], 3072  }
  0xec   : > { %3554 = vsyncadd (%p4286_p4), [#allocation11], 4294964224  ;;  %p4287_p10 = pmov %p4284_p1 }
  0xed   : > { %p4288_p6 = pmov %p4284_p1 }
  0xee   : > { %3556 = dma.done.wait (%p4287_p10), [#allocation14], 2048  }
  0xef   : > { %3558 = vsyncadd (%p4288_p6), [#allocation14], 4294965248 }
  0xf0   : > { %524 = sfence }
  0xf1   : > { %v2948_v0 = vld [vmem:[#allocation9] sm:$0xff]   ;;  %v2949_v1 = vld [vmem:[#allocation9 + $0x8] sm:$0xff]   ;;  %v3590_v2 = vmov 0   ;;  %v2950_v3 = vld [vmem:[#allocation9 + $0x10] sm:$0xff]   ;;  %s3965_s17 = sshll.u32 %s3681_s27, 4  ;;  %s590_s12 = sld [smem:[#allocation2]] }
  0xf2   : > { %2946 = vset.pattern.permute.xlu0 %v3590_v2  ;;  %2947 = vset.pattern.permute.xlu1 %v3590_v2  ;;  %v2951_v4 = vld [vmem:[#allocation9 + $0x18] sm:$0xff]   ;;  %v2956_v5 = vld [vmem:[%s3938_s13] sm:$0xff]   ;;  %v2953_v7 = vld [vmem:[#allocation9 + $0x28] sm:$0xff]   ;;  %p578_p12 = scmp.lt.s32.totalorder %s3965_s17, 31  ;;  %s2302_s6 = sld [smem:[#allocation2 + $0x1]]  ;;  %vm3592_vm0 = vmmov 0  }
  0xf3   : > { %2537 = vmatprep.subr.bf16.mxu1 %v2948_v0  ;;  %2553 = vmatprep.mubr.bf16.mxu1 %v2956_v5  ;;  %v2952_v6 = vld [vmem:[#allocation9 + $0x20] sm:$0xff]   ;;  %v2954_v8 = vld [vmem:[#allocation9 + $0x30] sm:$0xff]   ;;  %v2955_v9 = vld [vmem:[#allocation9 + $0x38] sm:$0xff]   ;;  %s4289_s15 = sld [smem:[#allocation31_spill]]  ;;  %s4290_s10 = sld [smem:[#allocation32_spill]] }
  0xf4   : > { %2538 = vmatpush3.bf16.msra.mxu1 %v2948_v0  ;;  %s3969_s7 = scalar_select %p578_p12, %s3965_s17, 31  ;;  %v2958_v10 = vld [vmem:[#allocation10] sm:$0xff]   ;;  %v2957_v11 = vld [vmem:[%s3938_s13 + $0x8] sm:$0xff]   ;;  %v2960_v13 = vld [vmem:[%s3938_s13 + $0x10] sm:$0xff]  }
  0xf5   : > { %2539 = vmatprep.subr.bf16.mxu1 %v2949_v1  ;;  %v2959_v12 = vld [vmem:[#allocation10 + $0x8] sm:$0xff]   ;;  %v2962_v23 = vld [vmem:[#allocation10 + $0x10] sm:$0xff]   ;;  %v2961_v31 = vld [vmem:[%s3938_s13 + $0x18] sm:$0xff]   ;;  %p4292_p11 = scmp.ne.s32.totalorder %s4274_s11, 0  ;;  %s3594_s9 = smov [#allocation15]  }
  0xf6   : > { %s2299_s18 = sshll.u32 %s3969_s7, 3  ;;  %v2964_v33 = vld [vmem:[%s3938_s13 + $0x20] sm:$0xff]   ;;  %v2963_v36 = vld [vmem:[#allocation10 + $0x18] sm:$0xff]   ;;  %v2965_v45 = vld [vmem:[%s3938_s13 + $0x28] sm:$0xff]   ;;  %s574_s7 = scalar_lea.vmem [#allocation15], %s3934_s23 }
  0xf7   : > { %s3978_s20 = scalar_lea.vmem %s4234_s3, %s2299_s18  ;;  %v2966_v41 = vld [vmem:[#allocation10 + $0x20] sm:$0xff]   ;;  %v2968_v48 = vld [vmem:[%s3938_s13 + $0x30] sm:$0xff]   ;;  %v2967_v52 = vld [vmem:[#allocation10 + $0x28] sm:$0xff]   ;;  %s4089_s26 = scalar_lea.vmem %s4235_s4, %s2299_s18 }
  0xf8   : > { %2540 = vmatpush3.bf16.msra.mxu1 %v2949_v1  ;;  %v1237_v14 = vld [vmem:[%s3978_s20] sm:$0xff]  ;;  %v1238_v15 = vld [vmem:[%s3978_s20 + $0x8] sm:$0xff]  ;;  %v1239_v16 = vld [vmem:[%s3978_s20 + $0x10] sm:$0xff]  ;;  %s2113_s18 = sshll.u32 %s574_s7, 4  ;;  %s4189_s18 = int_to_ptr.vmem [resolvable:$true] %s2113_s18 }
  0xf9   : > { %2541 = vmatprep.subr.bf16.mxu1 %v2950_v3  ;;  %v2368_v17 = vmul.f32 -1.442695, %v1237_v14  ;;  %v2369_v18 = vmul.f32 -1.442695, %v1238_v15  ;;  %v2370_v19 = vmul.f32 -1.442695, %v1239_v16 }
  0xfa   : > { %v1241_v20 = vld [vmem:[%s3978_s20 + $0x20] sm:$0xff]  ;;  %v1240_v21 = vld [vmem:[%s3978_s20 + $0x18] sm:$0xff]  ;;  %v1243_v22 = vld [vmem:[%s3978_s20 + $0x30] sm:$0xff]  ;;  %s3491_s0 = scalar_lea.vmem %s4189_s18, 16 }
  0xfb   : > { %2980 = vpow2.f32 %v2368_v17  ;;  %v2372_v24 = vmul.f32 -1.442695, %v1241_v20  ;;  %v2371_v25 = vmul.f32 -1.442695, %v1240_v21  ;;  %v2374_v26 = vmul.f32 -1.442695, %v1243_v22  ;;  %p3492_p2 = scmp.ne.s32.totalorder %s4189_s18, %s3491_s0 }
  0xfc   : > { %2542 = vmatpush3.bf16.msra.mxu1 %v2950_v3  ;;  %2982 = vpow2.f32 %v2369_v18  ;;  %v1242_v27 = vld [vmem:[%s3978_s20 + $0x28] sm:$0xff]  ;;  %v1245_v28 = vld [vmem:[%s3978_s20 + $0x40] sm:$0xff]  ;;  %v1244_v29 = vld [vmem:[%s3978_s20 + $0x38] sm:$0xff] }
  0xfd   : > { %2543 = vmatprep.subr.bf16.mxu1 %v2951_v4  ;;  %2984 = vpow2.f32 %v2370_v19  ;;  %v2373_v30 = vmul.f32 -1.442695, %v1242_v27  ;;  %v2376_v32 = vmul.f32 -1.442695, %v1245_v28  ;;  %v2375_v34 = vmul.f32 -1.442695, %v1244_v29  ;;  %p3493_p13 = pnand %p3492_p2, %p4292_p11 }
  0xfe   : > { %2986 = vpow2.f32 %v2372_v24  ;;  %v1247_v35 = vld [vmem:[%s3978_s20 + $0x50] sm:$0xff]  ;;  %v1246_v37 = vld [vmem:[%s3978_s20 + $0x48] sm:$0xff]  ;;  %v1248_v39 = vld [vmem:[%s3978_s20 + $0x58] sm:$0xff] }
  0xff   : > { %2988 = vpow2.f32 %v2371_v25  ;;  %v2378_v38 = vmul.f32 -1.442695, %v1247_v35  ;;  %v2377_v40 = vmul.f32 -1.442695, %v1246_v37  ;;  %v2379_v43 = vmul.f32 -1.442695, %v1248_v39  ;;  %p3494_p0 = pneg %p3493_p13 }
 0x100   : > { %2544 = vmatpush3.bf16.msra.mxu1 %v2951_v4  ;;  %2990 = vpow2.f32 %v2374_v26  ;;  %v1249_v50 = vld [vmem:[%s3978_s20 + $0x60] sm:$0xff]  ;;  %v2970_v61 = vld [vmem:[#allocation10 + $0x30] sm:$0xff]   ;;  %v2969_v0 = vld [vmem:[%s3938_s13 + $0x38] sm:$0xff]  }
 0x101   : > { %2545 = vmatprep.subr.bf16.mxu1 %v2952_v6  ;;  %2992 = vpow2.f32 %v2373_v30  ;;  %v2380_v57 = vmul.f32 -1.442695, %v1249_v50  ;;  %v1251_v2 = vld [vmem:[%s3978_s20 + $0x70] sm:$0xff]  ;;  %v2972_v3 = vld [vmem:[%s3945_s5] sm:$0xff]   ;;  %v1250_v5 = vld [vmem:[%s3978_s20 + $0x68] sm:$0xff] }
 0x102   : > { %2994 = vpow2.f32 %v2376_v32  ;;  %v2973_v20 = vld [vmem:[%s3945_s5 + $0x8] sm:$0xff]   ;;  %v2974_v21 = vld [vmem:[%s3945_s5 + $0x10] sm:$0xff]  }
 0x103   : > { %2996 = vpow2.f32 %v2375_v34  ;;  %v1494_v50 = vld [vmem:[#allocation12 + $0x8] sm:$0xff] }
 0x104   : > { %2546 = vmatpush3.bf16.msra.mxu1 %v2952_v6  ;;  %2998 = vpow2.f32 %v2378_v38 }
 0x105   : > { %2547 = vmatprep.subr.bf16.mxu1 %v2953_v7  ;;  %v2981_v42 = vpop.eup %2980  ;;  %3000 = vpow2.f32 %v2377_v40 }
 0x106   : > { %v2983_v44 = vpop.eup %2982  ;;  %v1301_v46 = vadd.f32 1.0, %v2981_v42  ;;  %v2977_v42 = vld [vmem:[%s3945_s5 + $0x28] sm:$0xff]  }
 0x107   : > { %v2985_v47 = vpop.eup %2984  ;;  %v1302_v49 = vadd.f32 1.0, %v2983_v44 }
 0x108   : > { %2548 = vmatpush3.bf16.msra.mxu1 %v2953_v7  ;;  %v2987_v51 = vpop.eup %2986  ;;  %3002 = vrcp.f32 %v1301_v46  ;;  %v1303_v53 = vadd.f32 1.0, %v2985_v47  ;;  %v2971_v7 = vld [vmem:[#allocation10 + $0x38] sm:$0xff]  }
 0x109   : > { %2549 = vmatprep.subr.bf16.mxu1 %v2954_v8  ;;  %v2989_v54 = vpop.eup %2988  ;;  %3004 = vpow2.f32 %v2379_v43  ;;  %v1305_v59 = vadd.f32 1.0, %v2987_v51  ;;  %v2978_v43 = vld [vmem:[%s3945_s5 + $0x30] sm:$0xff]   ;;  %v2979_v47 = vld [vmem:[%s3945_s5 + $0x38] sm:$0xff]  }
 0x10a   : > { %v2991_v55 = vpop.eup %2990  ;;  %3006 = vrcp.f32 %v1303_v53  ;;  %v1304_v56 = vadd.f32 1.0, %v2989_v54  ;;  %v1496_v53 = vld [vmem:[#allocation12 + $0x18] sm:$0xff] }
 0x10b   : > { %v2993_v58 = vpop.eup %2992  ;;  %3008 = vrcp.f32 %v1302_v49  ;;  %v1307_v1 = vadd.f32 1.0, %v2991_v55  ;;  %v1493_v49 = vld [vmem:[#allocation12] sm:$0xff] }
 0x10c   : > { %2550 = vmatpush3.bf16.msra.mxu1 %v2954_v8  ;;  %v2995_v60 = vpop.eup %2994  ;;  %3010 = vrcp.f32 %v1304_v56  ;;  %v1306_v62 = vadd.f32 1.0, %v2993_v58  ;;  %v2748_v51 = vpack.c.bf16 %v1494_v50, %v1493_v49  ;;  %v1497_v55 = vld [vmem:[#allocation12 + $0x20] sm:$0xff]  ;;  %v1498_v56 = vld [vmem:[#allocation12 + $0x28] sm:$0xff]  ;;  %v1499_v58 = vld [vmem:[#allocation12 + $0x30] sm:$0xff] }
 0x10d   : > { %2551 = vmatprep.subr.bf16.mxu1 %v2955_v9  ;;  %v2997_v63 = vpop.eup %2996  ;;  %3012 = vpow2.f32 %v2380_v57  ;;  %v1309_v4 = vadd.f32 1.0, %v2995_v60  ;;  %v2756_v57 = vpack.c.bf16 %v1498_v56, %v1497_v55 }
 0x10e   : > { %3014 = vrcp.f32 %v1305_v59  ;;  %v2999_v6 = vpop.eup %2998  ;;  %v1308_v8 = vadd.f32 1.0, %v2997_v63  ;;  %2749 = vmatprep.subr.bf16.mxu0 %v2748_v51  ;;  %v1500_v59 = vld [vmem:[#allocation12 + $0x38] sm:$0xff] }
 0x10f   : > { %3016 = vrcp.f32 %v1306_v62  ;;  %v1311_v22 = vadd.f32 1.0, %v2999_v6  ;;  %2751 = vmatpush3.bf16.msra.mxu0 %v2748_v51  ;;  %v2760_v60 = vpack.c.bf16 %v1500_v59, %v1499_v58  ;;  %v1502_v62 = vld [vmem:[#allocation12 + $0x48] sm:$0xff]  ;;  %v1507_v6 = vld [vmem:[#allocation12 + $0x70] sm:$0xff] }
 0x110   : > { %2552 = vmatpush3.bf16.msra.mxu1 %v2955_v9  ;;  %v1252_v9 = vld [vmem:[%s3978_s20 + $0x78] sm:$0xff]  ;;  %3018 = vrcp.f32 %v1307_v1  ;;  %s4291_s20 = sld [smem:[#allocation33_spill]] }
 0x111   : > { %2569 = vmatprep.subr.bf16.mxu1 %v2958_v10  ;;  %3020 = vrcp.f32 %v1309_v4  ;;  %v2383_v15 = vmul.f32 -1.442695, %v1252_v9  ;;  %v1504_v1 = vld [vmem:[#allocation12 + $0x58] sm:$0xff]  ;;  %v1506_v4 = vld [vmem:[#allocation12 + $0x68] sm:$0xff]  ;;  %v1757_v9 = vld [vmem:[#allocation13] sm:$0xff] }
 0x112   : > { %3022 = vrcp.f32 %v1308_v8 }
 0x113   : > { %2554 = vmatmul.mubr.bf16.vlgmr.msra.gmra.mrb[0].mxu1 %v2957_v11  ;;  %v2382_v11 = vmul.f32 -1.442695, %v1251_v2 }
 0x114   : > { %2570 = vmatpush3.bf16.msra.mxu1 %v2958_v10  ;;  %2557 = vmatprep.mubr.bf16.mxu1 %v2960_v13  ;;  %v3001_v10 = vpop.eup %3000  ;;  %v2381_v13 = vmul.f32 -1.442695, %v1250_v5 }
 0x115   : > { %2571 = vmatprep.subr.bf16.mxu1 %v2959_v12  ;;  %v1310_v17 = vadd.f32 1.0, %v3001_v10  ;;  %3024 = vpow2.f32 %v2382_v11  ;;  %v1758_v10 = vld [vmem:[#allocation13 + $0x8] sm:$0xff] }
 0x116   : > { %3026 = vpow2.f32 %v2381_v13  ;;  %v2780_v11 = vpack.c.bf16 %v1758_v10, %v1757_v9 }
 0x117   : > { %3028 = vpow2.f32 %v2383_v15 }
 0x118   : > { %2572 = vmatpush3.bf16.msra.mxu1 %v2959_v12  ;;  %v3003_v12 = vpop.eup %3002  ;;  %3030 = vrcp.f32 %v1310_v17 }
 0x119   : > { %2573 = vmatprep.subr.bf16.mxu1 %v2962_v23  ;;  %v3005_v14 = vpop.eup %3004  ;;  %1367 = vperm.xlu0 %2946, %v3003_v12   ;;  %3032 = vrcp.f32 %v1311_v22  ;;  %v4010_v12 = vstv %s590_s12  ;;  %s4187_s12 = scalar_lea.hbm %s4291_s20, %s3965_s17 }
 0x11a   : > { %v3007_v16 = vpop.eup %3006  ;;  %v1312_v24 = vadd.f32 1.0, %v3005_v14 }
 0x11b   : > { %2558 = vmatmul.mubr.bf16.gmra.mrb[4].mxu1 %v2961_v31  ;;  %v3009_v18 = vpop.eup %3008  ;;  %1377 = vperm.xlu1 %2947, %v3007_v16   ;;  %v2975_v31 = vld [vmem:[%s3945_s5 + $0x18] sm:$0xff]  }
 0x11c   : > { %2574 = vmatpush3.bf16.msra.mxu1 %v2962_v23  ;;  %2561 = vmatprep.mubr.bf16.mxu1 %v2964_v33  ;;  %v3011_v19 = vpop.eup %3010  ;;  %3034 = vrcp.f32 %v1312_v24  ;;  %v2976_v33 = vld [vmem:[%s3945_s5 + $0x20] sm:$0xff]   ;;  %s2303_s5 = sld [smem:[#allocation2 + $0x2]] }
 0x11d   : > { %2575 = vmatprep.subr.bf16.mxu1 %v2963_v36  ;;  %v3013_v23 = vpop.eup %3012  ;;  %1372 = vperm.xlu0 %2946, %v3009_v18  }
 0x11e   : > { %v3015_v25 = vpop.eup %3014  ;;  %v1313_v27 = vadd.f32 1.0, %v3013_v23 }
 0x11f   : > { %1382 = vperm.xlu1 %2947, %v3011_v19   ;;  %v3017_v26 = vpop.eup %3016 }
 0x120   : > { %2576 = vmatpush3.bf16.msra.mxu1 %v2963_v36  ;;  %v3019_v28 = vpop.eup %3018  ;;  %3036 = vrcp.f32 %v1313_v27 }
 0x121   : > { %2577 = vmatprep.subr.bf16.mxu1 %v2966_v41  ;;  %1387 = vperm.xlu0 %2946, %v3015_v25   ;;  %v3021_v29 = vpop.eup %3020 }
 0x122   : > { %v3023_v30 = vpop.eup %3022 }
 0x123   : > { %2562 = vmatmul.mubr.bf16.gmra.mrb[8].mxu1 %v2965_v45  ;;  %1392 = vperm.xlu1 %2947, %v3017_v26   ;;  %v3025_v32 = vpop.eup %3024 }
 0x124   : > { %2578 = vmatpush3.bf16.msra.mxu1 %v2966_v41  ;;  %2565 = vmatprep.mubr.bf16.mxu1 %v2968_v48  ;;  %v3027_v34 = vpop.eup %3026  ;;  %v1315_v35 = vadd.f32 1.0, %v3025_v32 }
 0x125   : > { %2579 = vmatprep.subr.bf16.mxu1 %v2967_v52  ;;  %1397 = vperm.xlu0 %2946, %v3019_v28   ;;  %v3029_v36 = vpop.eup %3028  ;;  %v1314_v37 = vadd.f32 1.0, %v3027_v34 }
 0x126   : > { %v3031_v38 = vpop.eup %3030  ;;  %3038 = vrcp.f32 %v1315_v35  ;;  %v1316_v39 = vadd.f32 1.0, %v3029_v36 }
 0x127   : > { %1402 = vperm.xlu1 %2947, %v3023_v30   ;;  %3040 = vrcp.f32 %v1314_v37  ;;  %v3033_v40 = vpop.eup %3032 }
 0x128   : > { %2580 = vmatpush3.bf16.msra.mxu1 %v2967_v52  ;;  %3042 = vrcp.f32 %v1316_v39  ;;  %v3035_v41 = vpop.eup %3034  ;;  %v1495_v52 = vld [vmem:[#allocation12 + $0x10] sm:$0xff] }
 0x129   : > { %2581 = vmatprep.subr.bf16.mxu1 %v2970_v61  ;;  %1407 = vperm.xlu0 %2946, %v3021_v29   ;;  %v2752_v54 = vpack.c.bf16 %v1496_v53, %v1495_v52 }
 0x12a   : > { %v3037_v44 = vpop.eup %3036 }
 0x12b   : > { %2566 = vmatmul.mubr.bf16.gmra.mrb[12].mxu1 %v2969_v0  ;;  %1412 = vperm.xlu1 %2947, %v3031_v38   ;;  %v1503_v0 = vld [vmem:[#allocation12 + $0x50] sm:$0xff] }
 0x12c   : > { %2582 = vmatpush3.bf16.msra.mxu1 %v2970_v61  ;;  %2585 = vmatprep.mubr.bf16.mxu1 %v2972_v3  ;;  %v1501_v61 = vld [vmem:[#allocation12 + $0x40] sm:$0xff]  ;;  %v2768_v2 = vpack.c.bf16 %v1504_v1, %v1503_v0 }
 0x12d   : > { %2583 = vmatprep.subr.bf16.mxu1 %v2971_v7  ;;  %1417 = vperm.xlu0 %2946, %v3033_v40   ;;  %v2764_v63 = vpack.c.bf16 %v1502_v62, %v1501_v61  ;;  %v1505_v3 = vld [vmem:[#allocation12 + $0x60] sm:$0xff] }
 0x12e   : > { %2753 = vmatprep.subr.bf16.mxu0 %v2752_v54  ;;  %v2772_v5 = vpack.c.bf16 %v1506_v4, %v1505_v3 }
 0x12f   : > { %1422 = vperm.xlu1 %2947, %v3035_v41   ;;  %2755 = vmatpush3.bf16.msra.mxu0 %v2752_v54 }
 0x130   : > { %2584 = vmatpush3.bf16.msra.mxu1 %v2971_v7  ;;  %v3039_v45 = vpop.eup %3038  ;;  %2757 = vmatprep.subr.bf16.mxu0 %v2756_v57  ;;  %v1508_v7 = vld [vmem:[#allocation12 + $0x78] sm:$0xff] }
 0x131   : > { %1427 = vperm.xlu0 %2946, %v3037_v44   ;;  %v3041_v46 = vpop.eup %3040  ;;  %v2776_v8 = vpack.c.bf16 %v1508_v7, %v1507_v6  ;;  %2781 = vmatprep.subr.bf16.mxu1 %v2780_v11 }
 0x132   : > { %v3043_v48 = vpop.eup %3042 }
 0x133   : > { %2586 = vmatmul.mubr.bf16.vlgmr.msra.gmra.mrb[16].mxu1 %v2973_v20  ;;  %1432 = vperm.xlu1 %2947, %v3041_v46  }
 0x134   : > { %2589 = vmatprep.mubr.bf16.mxu1 %v2974_v21  ;;  %2759 = vmatpush3.bf16.msra.mxu0 %v2756_v57 }
 0x135   : > { %1437 = vperm.xlu0 %2946, %v3039_v45   ;;  %2761 = vmatprep.subr.bf16.mxu0 %v2760_v60 }
 0x136   : > { %2783 = vmatpush3.bf16.msra.mxu1 %v2780_v11 }
 0x137   : > { %1442 = vperm.xlu1 %2947, %v3043_v48  }
 0x138   : > { %2763 = vmatpush3.bf16.msra.mxu0 %v2760_v60 }
 0x139   : > { %2765 = vmatprep.subr.bf16.mxu0 %v2764_v63 }
 0x13b   : > { %2590 = vmatmul.mubr.bf16.gmra.mrb[20].mxu1 %v2975_v31 }
 0x13c   : > { %2593 = vmatprep.mubr.bf16.mxu1 %v2976_v33  ;;  %2767 = vmatpush3.bf16.msra.mxu0 %v2764_v63 }
 0x13d   : > { %2769 = vmatprep.subr.bf16.mxu0 %v2768_v2 }
 0x140   : > { %2771 = vmatpush3.bf16.msra.mxu0 %v2768_v2 }
 0x141   : > { %2773 = vmatprep.subr.bf16.mxu0 %v2772_v5 }
 0x143   : > { %2594 = vmatmul.mubr.bf16.gmra.mrb[24].mxu1 %v2977_v42 }
 0x144   : > { %2597 = vmatprep.mubr.bf16.mxu1 %v2978_v43  ;;  %2775 = vmatpush3.bf16.msra.mxu0 %v2772_v5  ;;  %v4026_v5 = vstv %s2302_s6  ;;  %s2101_s6 = scalar_lea.sflag [#allocation4], %s3934_s23 }
 0x145   : > { %2777 = vmatprep.subr.bf16.mxu0 %v2776_v8 }
 0x148   : > { %2779 = vmatpush3.bf16.msra.mxu0 %v2776_v8 }
 0x14b   : > { %2598 = vmatmul.mubr.bf16.gmra.mrb[28].mxu1 %v2979_v47 }
 0x1e6   : > { %v2555_v13 = vpop.f32.mrb[0].mxu1 }
 0x1e7   : > { %v765_v14 = vadd.f32 %v2555_v13, %v4010_v12  ;;  %v756_v15 = vpop.f32.mrb[1].mxu1 }
 0x1e8   : > { %v757_v16 = vadd.f32 %v756_v15, %v4010_v12  ;;  %v2556_v17 = vpop.f32.mrb[2].mxu1 }
 0x1e9   : > { %v768_v18 = vadd.f32 %v2556_v17, %v4010_v12  ;;  %v759_v19 = vpop.f32.mrb[3].mxu1  ;;  %v2322_v20 = vmul.f32 -1.442695, %v765_v14 }
 0x1ea   : > { %v2320_v21 = vmul.f32 -1.442695, %v757_v16  ;;  %v760_v22 = vadd.f32 %v759_v19, %v4010_v12 }
 0x1eb   : > { %v2323_v23 = vmul.f32 -1.442695, %v768_v18  ;;  %3044 = vpow2.f32 %v2322_v20 }
 0x1ec   : > { %3046 = vpow2.f32 %v2320_v21  ;;  %v2321_v25 = vmul.f32 -1.442695, %v760_v22 }
 0x1ed   : > { %3048 = vpow2.f32 %v2323_v23 }
 0x1ee   : > { %v2559_v24 = vpop.f32.mrb[4].mxu1  ;;  %3050 = vpow2.f32 %v2321_v25 }
 0x1ef   : > { %v781_v26 = vadd.f32 %v2559_v24, %v4010_v12  ;;  %v772_v27 = vpop.f32.mrb[5].mxu1 }
 0x1f0   : > { %v773_v28 = vadd.f32 %v772_v27, %v4010_v12  ;;  %v2560_v29 = vpop.f32.mrb[6].mxu1 }
 0x1f1   : > { %v784_v30 = vadd.f32 %v2560_v29, %v4010_v12  ;;  %v775_v31 = vpop.f32.mrb[7].mxu1  ;;  %v2326_v32 = vmul.f32 -1.442695, %v781_v26 }
 0x1f2   : > { %v776_v33 = vadd.f32 %v775_v31, %v4010_v12  ;;  %v2324_v34 = vmul.f32 -1.442695, %v773_v28 }
 0x1f3   : > { %v2327_v35 = vmul.f32 -1.442695, %v784_v30  ;;  %3052 = vpow2.f32 %v2326_v32 }
 0x1f4   : > { %v2325_v36 = vmul.f32 -1.442695, %v776_v33  ;;  %3054 = vpow2.f32 %v2324_v34 }
 0x1f5   : > { %v3045_v39 = vpop.eup %3044  ;;  %3056 = vpow2.f32 %v2327_v35 }
 0x1f6   : > { %v2563_v37 = vpop.f32.mrb[8].mxu1  ;;  %v3047_v41 = vpop.eup %3046  ;;  %3058 = vpow2.f32 %v2325_v36  ;;  %v869_v45 = vadd.f32 1.0, %v3045_v39 }
 0x1f7   : > { %v788_v38 = vpop.f32.mrb[9].mxu1  ;;  %v3049_v43 = vpop.eup %3048  ;;  %v797_v44 = vadd.f32 %v2563_v37, %v4010_v12  ;;  %v867_v47 = vadd.f32 1.0, %v3047_v41 }
 0x1f8   : > { %v2564_v40 = vpop.f32.mrb[10].mxu1  ;;  %v789_v46 = vadd.f32 %v788_v38, %v4010_v12  ;;  %v3051_v48 = vpop.eup %3050  ;;  %v870_v49 = vadd.f32 1.0, %v3049_v43  ;;  %3060 = vrcp.f32 %v869_v45 }
 0x1f9   : > { %v791_v42 = vpop.f32.mrb[11].mxu1  ;;  %v800_v50 = vadd.f32 %v2564_v40, %v4010_v12  ;;  %v2330_v51 = vmul.f32 -1.442695, %v797_v44  ;;  %3062 = vrcp.f32 %v867_v47  ;;  %v868_v57 = vadd.f32 1.0, %v3051_v48 }
 0x1fa   : > { %v792_v52 = vadd.f32 %v791_v42, %v4010_v12  ;;  %v2328_v54 = vmul.f32 -1.442695, %v789_v46  ;;  %3064 = vrcp.f32 %v870_v49 }
 0x1fb   : > { %v2331_v60 = vmul.f32 -1.442695, %v800_v50  ;;  %3066 = vpow2.f32 %v2330_v51 }
 0x1fc   : > { %v2329_v63 = vmul.f32 -1.442695, %v792_v52  ;;  %3068 = vpow2.f32 %v2328_v54 }
 0x1fd   : > { %v3053_v56 = vpop.eup %3052  ;;  %3070 = vrcp.f32 %v868_v57  ;;  %v4060_v57 = vpop.permute.xlu0 %1367 }
 0x1fe   : > { %v2567_v53 = vpop.f32.mrb[12].mxu1  ;;  %v3055_v59 = vpop.eup %3054  ;;  %v873_v1 = vadd.f32 1.0, %v3053_v56  ;;  %3072 = vpow2.f32 %v2331_v60 }
 0x1ff   : > { %v804_v55 = vpop.f32.mrb[13].mxu1  ;;  %v3057_v62 = vpop.eup %3056  ;;  %v813_v2 = vadd.f32 %v2567_v53, %v4010_v12  ;;  %v871_v3 = vadd.f32 1.0, %v3055_v59  ;;  %3074 = vpow2.f32 %v2329_v63 }
 0x200   : > { %v2568_v58 = vpop.f32.mrb[14].mxu1  ;;  %v3059_v0 = vpop.eup %3058  ;;  %v805_v4 = vadd.f32 %v804_v55, %v4010_v12  ;;  %v874_v6 = vadd.f32 1.0, %v3057_v62  ;;  %3076 = vrcp.f32 %v873_v1 }
 0x201   : > { %v807_v61 = vpop.f32.mrb[15].mxu1  ;;  %v872_v7 = vadd.f32 1.0, %v3059_v0  ;;  %v2334_v9 = vmul.f32 -1.442695, %v813_v2  ;;  %3078 = vrcp.f32 %v871_v3  ;;  %v816_v17 = vadd.f32 %v2568_v58, %v4010_v12 }
 0x202   : > { %v2332_v13 = vmul.f32 -1.442695, %v805_v4  ;;  %v4030_v16 = vpop.eup %3060  ;;  %3080 = vrcp.f32 %v874_v6  ;;  %v808_v22 = vadd.f32 %v807_v61, %v4010_v12 }
 0x203   : > { %v4034_v21 = vpop.eup %3062  ;;  %3082 = vrcp.f32 %v872_v7  ;;  %v2335_v30 = vmul.f32 -1.442695, %v816_v17  ;;  %v4065_v7 = vpop.permute.xlu1 %1377 }
 0x204   : > { %v4038_v25 = vpop.eup %3064  ;;  %3084 = vpow2.f32 %v2334_v9  ;;  %v2333_v32 = vmul.f32 -1.442695, %v808_v22 }
 0x205   : > { %v3067_v27 = vpop.eup %3066  ;;  %3086 = vpow2.f32 %v2332_v13 }
 0x206   : > { %v2587_v8 = vpop.f32.mrb[16].mxu1  ;;  %v3069_v29 = vpop.eup %3068  ;;  %v877_v12 = vadd.f32 1.0, %v3067_v27 }
 0x207   : > { %v1087_v10 = vadd.f32 %v2587_v8, %v4026_v5  ;;  %v1078_v11 = vpop.f32.mrb[17].mxu1  ;;  %v4040_v31 = vpop.eup %3070  ;;  %v875_v38 = vadd.f32 1.0, %v3069_v29 }
 0x208   : > { %v1079_v14 = vadd.f32 %v1078_v11, %v4026_v5  ;;  %v2588_v15 = vpop.f32.mrb[18].mxu1  ;;  %v3073_v34 = vpop.eup %3072 }
 0x209   : > { %v2354_v18 = vmul.f32 -1.442695, %v1087_v10  ;;  %v1090_v19 = vadd.f32 %v2588_v15, %v4026_v5  ;;  %v1081_v20 = vpop.f32.mrb[19].mxu1  ;;  %v4043_v37 = vpop.eup %3074  ;;  %v878_v53 = vadd.f32 1.0, %v3073_v34 }
 0x20a   : > { %v2352_v23 = vmul.f32 -1.442695, %v1079_v14  ;;  %v1082_v24 = vadd.f32 %v1081_v20, %v4026_v5  ;;  %v4046_v41 = vpop.eup %3076  ;;  %v1383_v29 = vpop.permute.xlu1 %1382 }
 0x20b   : > { %v2355_v26 = vmul.f32 -1.442695, %v1090_v19  ;;  %3088 = vpow2.f32 %v2354_v18  ;;  %v4049_v45 = vpop.eup %3078  ;;  %v1373_v18 = vpop.permute.xlu0 %1372 }
 0x20c   : > { %v2353_v28 = vmul.f32 -1.442695, %v1082_v24  ;;  %3090 = vpow2.f32 %v2352_v23  ;;  %v4052_v48 = vpop.eup %3080 }
 0x20d   : > { %3092 = vpow2.f32 %v2355_v26  ;;  %v4054_v50 = vpop.eup %3082 }
 0x20e   : > { %v2591_v33 = vpop.f32.mrb[20].mxu1  ;;  %3094 = vpow2.f32 %v2353_v28  ;;  %v4056_v52 = vpop.eup %3084 }
 0x20f   : > { %v1103_v35 = vadd.f32 %v2591_v33, %v4026_v5  ;;  %v1094_v36 = vpop.f32.mrb[21].mxu1  ;;  %3096 = vpow2.f32 %v2335_v30  ;;  %v4058_v54 = vpop.eup %3086 }
 0x210   : > { %v1095_v39 = vadd.f32 %v1094_v36, %v4026_v5  ;;  %v2592_v40 = vpop.f32.mrb[22].mxu1  ;;  %3098 = vpow2.f32 %v2333_v32 }
 0x211   : > { %v2358_v42 = vmul.f32 -1.442695, %v1103_v35  ;;  %v1106_v43 = vadd.f32 %v2592_v40, %v4026_v5  ;;  %v1097_v44 = vpop.f32.mrb[23].mxu1  ;;  %3100 = vrcp.f32 %v877_v12 }
 0x212   : > { %v2356_v46 = vmul.f32 -1.442695, %v1095_v39  ;;  %v1098_v47 = vadd.f32 %v1097_v44, %v4026_v5  ;;  %3102 = vrcp.f32 %v875_v38 }
 0x213   : > { %v2359_v49 = vmul.f32 -1.442695, %v1106_v43  ;;  %3104 = vpow2.f32 %v2358_v42  ;;  %v4082_v43 = vpop.permute.xlu0 %1387 }
 0x214   : > { %v2357_v51 = vmul.f32 -1.442695, %v1098_v47  ;;  %3106 = vpow2.f32 %v2356_v46 }
 0x215   : > { %v3089_v56 = vpop.eup %3088  ;;  %3108 = vpow2.f32 %v2359_v49 }
 0x216   : > { %v2595_v55 = vpop.f32.mrb[24].mxu1  ;;  %v3091_v60 = vpop.eup %3090  ;;  %v1191_v61 = vadd.f32 1.0, %v3089_v56  ;;  %3110 = vpow2.f32 %v2357_v51  ;;  %v876_v56 = vadd.f32 1.0, %v4043_v37 }
 0x217   : > { %v1119_v58 = vadd.f32 %v2595_v55, %v4026_v5  ;;  %v1110_v59 = vpop.f32.mrb[25].mxu1  ;;  %v3093_v0 = vpop.eup %3092  ;;  %3112 = vrcp.f32 %v878_v53  ;;  %v1189_v1 = vadd.f32 1.0, %v3091_v60 }
 0x218   : > { %v1111_v62 = vadd.f32 %v1110_v59, %v4026_v5  ;;  %v2596_v63 = vpop.f32.mrb[26].mxu1  ;;  %v3095_v4 = vpop.eup %3094  ;;  %3114 = vrcp.f32 %v1191_v61  ;;  %v1192_v6 = vadd.f32 1.0, %v3093_v0 }
 0x219   : > { %v1122_v2 = vadd.f32 %v2596_v63, %v4026_v5  ;;  %v1113_v3 = vpop.f32.mrb[27].mxu1  ;;  %v2362_v8 = vmul.f32 -1.442695, %v1119_v58  ;;  %v4068_v10 = vpop.eup %3096  ;;  %3116 = vrcp.f32 %v1189_v1  ;;  %v1190_v11 = vadd.f32 1.0, %v3095_v4 }
 0x21a   : > { %v1114_v9 = vadd.f32 %v1113_v3, %v4026_v5  ;;  %v2360_v13 = vmul.f32 -1.442695, %v1111_v62  ;;  %v4070_v14 = vpop.eup %3098  ;;  %3118 = vrcp.f32 %v1192_v6  ;;  %v4094_v59 = vpop.permute.xlu1 %1392  ;;  %v1461_v62 = vld [vmem:[%s4089_s26] sm:$0xff] }
 0x21b   : > { %v2363_v15 = vmul.f32 -1.442695, %v1122_v2  ;;  %v4072_v17 = vpop.eup %3100  ;;  %3120 = vrcp.f32 %v1190_v11  ;;  %v1462_v2 = vld [vmem:[%s4089_s26 + $0x8] sm:$0xff] }
 0x21c   : > { %v2361_v19 = vmul.f32 -1.442695, %v1114_v9  ;;  %v4074_v20 = vpop.eup %3102  ;;  %3122 = vpow2.f32 %v2362_v8 }
 0x21d   : > { %v3105_v23 = vpop.eup %3104  ;;  %3124 = vpow2.f32 %v2360_v13 }
 0x21e   : > { %v2599_v22 = vpop.f32.mrb[28].mxu1  ;;  %v3107_v27 = vpop.eup %3106  ;;  %v1195_v28 = vadd.f32 1.0, %v3105_v23  ;;  %3126 = vpow2.f32 %v2363_v15 }
 0x21f   : > { %v1135_v24 = vadd.f32 %v2599_v22, %v4026_v5  ;;  %v1126_v26 = vpop.f32.mrb[29].mxu1  ;;  %v3109_v33 = vpop.eup %3108  ;;  %v1193_v34 = vadd.f32 1.0, %v3107_v27  ;;  %3128 = vpow2.f32 %v2361_v19  ;;  %v1464_v27 = vld [vmem:[%s4089_s26 + $0x18] sm:$0xff] }
 0x220   : > { %v1127_v30 = vadd.f32 %v1126_v26, %v4026_v5  ;;  %v2600_v32 = vpop.f32.mrb[30].mxu1  ;;  %v3111_v36 = vpop.eup %3110  ;;  %3130 = vrcp.f32 %v1195_v28  ;;  %v1196_v38 = vadd.f32 1.0, %v3109_v33 }
 0x221   : > { %v1138_v12 = vadd.f32 %v2600_v32, %v4026_v5  ;;  %v1129_v35 = vpop.f32.mrb[31].mxu1  ;;  %v2366_v39 = vmul.f32 -1.442695, %v1135_v24  ;;  %v4080_v42 = vpop.eup %3112  ;;  %3132 = vrcp.f32 %v1193_v34  ;;  %v1194_v44 = vadd.f32 1.0, %v3111_v36  ;;  %v1465_v32 = vld [vmem:[%s4089_s26 + $0x20] sm:$0xff]  ;;  %v1466_v36 = vld [vmem:[%s4089_s26 + $0x28] sm:$0xff] }
 0x222   : > { %v1130_v40 = vadd.f32 %v1129_v35, %v4026_v5  ;;  %v2364_v46 = vmul.f32 -1.442695, %v1127_v30  ;;  %v3115_v47 = vpop.eup %3114  ;;  %3134 = vrcp.f32 %v1196_v38  ;;  %v1403_v23 = vpop.permute.xlu1 %1402  ;;  %v882_v24 = vadd.f32 1.0, %v4068_v10 }
 0x223   : > { %v2367_v49 = vmul.f32 -1.442695, %v1138_v12  ;;  %v3117_v51 = vpop.eup %3116  ;;  %v1351_v5 = vsub.f32 %v4030_v16, %v3115_v47  ;;  %3136 = vrcp.f32 %v1194_v44  ;;  %v1467_v44 = vld [vmem:[%s4089_s26 + $0x30] sm:$0xff] }
 0x224   : > { %v2365_v53 = vmul.f32 -1.442695, %v1130_v40  ;;  %v3119_v55 = vpop.eup %3118  ;;  %v1349_v58 = vsub.f32 %v4034_v21, %v3117_v51  ;;  %3138 = vpow2.f32 %v2366_v39  ;;  %v1398_v21 = vpop.permute.xlu0 %1397 }
 0x225   : > { %v3121_v60 = vpop.eup %3120  ;;  %v1352_v61 = vsub.f32 %v4038_v25, %v3119_v55  ;;  %3140 = vpow2.f32 %v2364_v46  ;;  %v1447_v37 = vmul.f32 %v4065_v7, %v1351_v5  ;;  %v1463_v25 = vld [vmem:[%s4089_s26 + $0x10] sm:$0xff] }
 0x226   : > { %v3123_v63 = vpop.eup %3122  ;;  %v1445_v16 = vmul.f32 %v4060_v57, %v1349_v58  ;;  %v1350_v0 = vsub.f32 %v4040_v31, %v3121_v60  ;;  %3142 = vpow2.f32 %v2367_v49  ;;  %v881_v57 = vadd.f32 1.0, %v4056_v52  ;;  %v1413_v47 = vpop.permute.xlu1 %1412  ;;  %v1468_v58 = vld [vmem:[%s4089_s26 + $0x38] sm:$0xff] }
 0x227   : > { %v3125_v1 = vpop.eup %3124  ;;  %v1199_v3 = vadd.f32 1.0, %v3123_v63  ;;  %3144 = vpow2.f32 %v2365_v53  ;;  %v879_v31 = vadd.f32 1.0, %v4058_v54  ;;  %v1448_v7 = vmul.f32 %v1383_v29, %v1352_v61 }
 0x228   : > { %v3127_v4 = vpop.eup %3126  ;;  %3146 = vrcp.f32 %v876_v56  ;;  %v1446_v6 = vmul.f32 %v1373_v18, %v1350_v0  ;;  %v1197_v8 = vadd.f32 1.0, %v3125_v1  ;;  %v1477_v9 = vmul.f32 %v1461_v62, %v1445_v16  ;;  %v1408_v33 = vpop.permute.xlu0 %1407  ;;  %v1469_v0 = vld [vmem:[%s4089_s26 + $0x40] sm:$0xff] }
 0x229   : > { %v3129_v11 = vpop.eup %3128  ;;  %3148 = vrcp.f32 %v1199_v3  ;;  %v1200_v13 = vadd.f32 1.0, %v3127_v4  ;;  %v1479_v26 = vmul.f32 %v1463_v25, %v1447_v37  ;;  %v880_v54 = vadd.f32 1.0, %v4070_v14  ;;  %v1470_v25 = vld [vmem:[%s4089_s26 + $0x48] sm:$0xff] }
 0x22a   : > { %v3131_v15 = vpop.eup %3130  ;;  %v1478_v19 = vmul.f32 %v1462_v2, %v1446_v6  ;;  %3150 = vrcp.f32 %v1197_v8  ;;  %v1198_v22 = vadd.f32 1.0, %v3129_v11  ;;  %2633 = vmatprep.mubr.f32.mxu0 %v1477_v9  ;;  %v1480_v12 = vmul.f32 %v1464_v27, %v1448_v7  ;;  %v1423_v37 = vpop.permute.xlu1 %1422  ;;  %v1471_v11 = vld [vmem:[%s4089_s26 + $0x50] sm:$0xff] }
 0x22b   : > { %v3133_v18 = vpop.eup %3132  ;;  %v1355_v28 = vsub.f32 %v4046_v41, %v3131_v15  ;;  %3152 = vrcp.f32 %v1200_v13 }
 0x22c   : > { %v3135_v52 = vpop.eup %3134  ;;  %v1353_v30 = vsub.f32 %v4049_v45, %v3133_v18  ;;  %3154 = vrcp.f32 %v1198_v22  ;;  %2634 = vmatmul.mubr.f32.vlgmr.msra.gmra.mrb[0].mxu0 %v1478_v19  ;;  %v1418_v60 = vpop.permute.xlu0 %1417  ;;  %v1472_v22 = vld [vmem:[%s4089_s26 + $0x58] sm:$0xff] }
 0x22d   : > { %v3137_v29 = vpop.eup %3136  ;;  %3156 = vrcp.f32 %v881_v57  ;;  %v1356_v10 = vsub.f32 %v4052_v48, %v3135_v52  ;;  %2636 = vmatprep.mubr.f32.mxu0 %v1479_v26  ;;  %v1451_v45 = vmul.f32 %v1398_v21, %v1355_v28  ;;  %v1473_v28 = vld [vmem:[%s4089_s26 + $0x60] sm:$0xff] }
 0x22e   : > { %v3139_v34 = vpop.eup %3138  ;;  %3158 = vrcp.f32 %v879_v31  ;;  %v1449_v41 = vmul.f32 %v4082_v43, %v1353_v30  ;;  %v1354_v14 = vsub.f32 %v4054_v50, %v3137_v29  ;;  %v1433_v18 = vpop.permute.xlu1 %1432 }
 0x22f   : > { %v3141_v35 = vpop.eup %3140  ;;  %3160 = vrcp.f32 %v882_v24  ;;  %v1203_v38 = vadd.f32 1.0, %v3139_v34  ;;  %v1452_v5 = vmul.f32 %v1403_v23, %v1356_v10  ;;  %v1483_v56 = vmul.f32 %v1467_v44, %v1451_v45  ;;  %v1474_v10 = vld [vmem:[%s4089_s26 + $0x68] sm:$0xff]  ;;  %v1760_v44 = vld [vmem:[#allocation13 + $0x18] sm:$0xff] }
 0x230   : > { %v3143_v39 = vpop.eup %3142  ;;  %3162 = vrcp.f32 %v880_v54  ;;  %v1481_v40 = vmul.f32 %v1465_v32, %v1449_v41  ;;  %v1450_v48 = vmul.f32 %v4094_v59, %v1354_v14  ;;  %v1201_v46 = vadd.f32 1.0, %v3141_v35  ;;  %2637 = vmatmul.mubr.f32.gmra.mrb[2].mxu0 %v1480_v12  ;;  %v1428_v57 = vpop.permute.xlu0 %1427  ;;  %v1475_v41 = vld [vmem:[%s4089_s26 + $0x70] sm:$0xff] }
 0x231   : > { %v3145_v49 = vpop.eup %3144  ;;  %3164 = vrcp.f32 %v1203_v38  ;;  %v1204_v43 = vadd.f32 1.0, %v3143_v39  ;;  %v1484_v1 = vmul.f32 %v1468_v58, %v1452_v5  ;;  %v1476_v38 = vld [vmem:[%s4089_s26 + $0x78] sm:$0xff]  ;;  %v1765_v5 = vld [vmem:[#allocation13 + $0x40] sm:$0xff]  ;;  %s3495_s26 = sshll.u32 %s3594_s9, 4  ;;  %s3496_s26 = int_to_ptr.vmem [resolvable:$false] %s3495_s26 }
 0x232   : > { %v3147_v51 = vpop.eup %3146  ;;  %v1482_v50 = vmul.f32 %v1466_v36, %v1450_v48  ;;  %3166 = vrcp.f32 %v1201_v46  ;;  %v1202_v53 = vadd.f32 1.0, %v3145_v49  ;;  %2639 = vmatprep.mubr.f32.mxu0 %v1481_v40  ;;  %v1443_v14 = vpop.permute.xlu1 %1442  ;;  %v1759_v40 = vld [vmem:[#allocation13 + $0x10] sm:$0xff]  ;;  %v1761_v46 = vld [vmem:[#allocation13 + $0x20] sm:$0xff]  ;;  %v1768_v58 = vld [vmem:[#allocation13 + $0x58] sm:$0xff]  ;;  %s3497_s25 = scalar_lea.vmem %s3496_s26, 32  ;;  %p3498_p8 = scmp.lt.s32.totalorder %s4189_s18, %s3496_s26 }
 0x233   : > { %v3149_v55 = vpop.eup %3148  ;;  %3168 = vrcp.f32 %v1204_v43  ;;  %v2784_v48 = vpack.c.bf16 %v1760_v44, %v1759_v40  ;;  %v1763_v43 = vld [vmem:[#allocation13 + $0x30] sm:$0xff]  ;;  %p3499_p3 = scmp.lt.s32.totalorder %s3497_s25, %s3491_s0 }
 0x234   : > { %v3151_v61 = vpop.eup %3150  ;;  %v1359_v59 = vsub.f32 %v4072_v17, %v3149_v55  ;;  %3170 = vrcp.f32 %v1202_v53  ;;  %2640 = vmatmul.mubr.f32.gmra.mrb[4].mxu0 %v1482_v50  ;;  %v1438_v29 = vpop.permute.xlu0 %1437  ;;  %v1766_v53 = vld [vmem:[#allocation13 + $0x48] sm:$0xff] }
 0x235   : > { %v3153_v62 = vpop.eup %3152  ;;  %v1357_v63 = vsub.f32 %v4074_v20, %v3151_v61  ;;  %2642 = vmatprep.mubr.f32.mxu0 %v1483_v56  ;;  %2785 = vmatprep.subr.bf16.mxu1 %v2784_v48  ;;  %v2796_v55 = vpack.c.bf16 %v1766_v53, %v1765_v5  ;;  %v1767_v56 = vld [vmem:[#allocation13 + $0x50] sm:$0xff]  ;;  %v1769_v61 = vld [vmem:[#allocation13 + $0x60] sm:$0xff]  ;;  %p3500_p7 = por %p3499_p3, %p3498_p8 }
 0x236   : > { %v3155_v16 = vpop.eup %3154  ;;  %v1360_v2 = vsub.f32 %v4080_v42, %v3153_v62  ;;  %v1455_v17 = vmul.f32 %v1418_v60, %v1359_v59  ;;  %2787 = vmatpush3.bf16.msra.mxu1 %v2784_v48  ;;  %v2800_v60 = vpack.c.bf16 %v1768_v58, %v1767_v56  ;;  %v1770_v59 = vld [vmem:[#allocation13 + $0x68] sm:$0xff] }
 0x237   : > { %v3157_v21 = vpop.eup %3156  ;;  %v1453_v3 = vmul.f32 %v1408_v33, %v1357_v63  ;;  %v1358_v4 = vsub.f32 %v3147_v51, %v3155_v16  ;;  %v1764_v51 = vld [vmem:[#allocation13 + $0x38] sm:$0xff]  ;;  %v2804_v62 = vpack.c.bf16 %v1770_v59, %v1769_v61  ;;  %v1771_v63 = vld [vmem:[#allocation13 + $0x70] sm:$0xff]  ;;  %p3501_p5 = pnand %p3500_p7, %p3494_p0 }
 0x238   : > { %v3159_v6 = vpop.eup %3158  ;;  %2643 = vmatmul.mubr.f32.gmra.mrb[6].mxu0 %v1484_v1  ;;  %v1456_v19 = vmul.f32 %v1423_v37, %v1360_v2  ;;  %v1487_v7 = vmul.f32 %v1471_v11, %v1455_v17  ;;  %v2792_v50 = vpack.c.bf16 %v1764_v51, %v1763_v43  ;;  %v1772_v16 = vld [vmem:[#allocation13 + $0x78] sm:$0xff]  ;;  %v4132_v1 = vld [vmem:[%s4239_s8] ss:$0 sm:$0xff] }
 0x239   : > { %v3161_v8 = vpop.eup %3160  ;;  %v1485_v9 = vmul.f32 %v1469_v0, %v1453_v3  ;;  %v1454_v20 = vmul.f32 %v1413_v47, %v1358_v4  ;;  %v1762_v47 = vld [vmem:[#allocation13 + $0x28] sm:$0xff]  ;;  %v2808_v0 = vpack.c.bf16 %v1772_v16, %v1771_v63 }
 0x23a   : > { %v3163_v31 = vpop.eup %3162  ;;  %v1488_v30 = vmul.f32 %v1472_v22, %v1456_v19  ;;  %v2788_v49 = vpack.c.bf16 %v1762_v47, %v1761_v46 }
 0x23b   : > { %v3165_v13 = vpop.eup %3164  ;;  %v1486_v15 = vmul.f32 %v1470_v25, %v1454_v20  ;;  %2645 = vmatprep.mubr.f32.mxu0 %v1485_v9 }
 0x23c   : > { %v3167_v42 = vpop.eup %3166  ;;  %v1363_v23 = vsub.f32 %v3157_v21, %v3165_v13  ;;  %2789 = vmatprep.subr.bf16.mxu1 %v2788_v49 }
 0x23d   : > { %v3169_v24 = vpop.eup %3168  ;;  %v1361_v26 = vsub.f32 %v3159_v6, %v3167_v42  ;;  %2646 = vmatmul.mubr.f32.gmra.mrb[8].mxu0 %v1486_v15  ;;  %2791 = vmatpush3.bf16.msra.mxu1 %v2788_v49 }
 0x23e   : > { %v3171_v27 = vpop.eup %3170  ;;  %v1364_v52 = vsub.f32 %v3161_v8, %v3169_v24  ;;  %2648 = vmatprep.mubr.f32.mxu0 %v1487_v7  ;;  %v1459_v33 = vmul.f32 %v1438_v29, %v1363_v23  ;;  %2793 = vmatprep.subr.bf16.mxu1 %v2792_v50 }
 0x23f   : > { %v1457_v54 = vmul.f32 %v1428_v57, %v1361_v26  ;;  %v1362_v32 = vsub.f32 %v3163_v31, %v3171_v27 }
 0x240   : > { %v1460_v45 = vmul.f32 %v1443_v14, %v1364_v52  ;;  %v1491_v36 = vmul.f32 %v1475_v41, %v1459_v33 }
 0x241   : > { %v1489_v34 = vmul.f32 %v1473_v28, %v1457_v54  ;;  %v1458_v12 = vmul.f32 %v1433_v18, %v1362_v32  ;;  %2649 = vmatmul.mubr.f32.gmra.mrb[10].mxu0 %v1488_v30  ;;  %2795 = vmatpush3.bf16.msra.mxu1 %v2792_v50 }
 0x242   : > { %v1492_v39 = vmul.f32 %v1476_v38, %v1460_v45  ;;  %2797 = vmatprep.subr.bf16.mxu1 %v2796_v55 }
 0x243   : > { %v1490_v35 = vmul.f32 %v1474_v10, %v1458_v12  ;;  %2651 = vmatprep.mubr.f32.mxu0 %v1489_v34 }
 0x245   : > { %2652 = vmatmul.mubr.f32.gmra.mrb[12].mxu0 %v1490_v35  ;;  %2799 = vmatpush3.bf16.msra.mxu1 %v2796_v55 }
 0x246   : > { %2654 = vmatprep.mubr.f32.mxu0 %v1491_v36  ;;  %2801 = vmatprep.subr.bf16.mxu1 %v2800_v60 }
 0x249   : > { %2655 = vmatmul.mubr.f32.gmra.mrb[14].mxu0 %v1492_v39  ;;  %2803 = vmatpush3.bf16.msra.mxu1 %v2800_v60 }
 0x24a   : > { %2805 = vmatprep.subr.bf16.mxu1 %v2804_v62 }
 0x24d   : > { %2807 = vmatpush3.bf16.msra.mxu1 %v2804_v62 }
 0x24e   : > { %2809 = vmatprep.subr.bf16.mxu1 %v2808_v0 }
 0x251   : > { %2811 = vmatpush3.bf16.msra.mxu1 %v2808_v0 }
 0x2ff   : > { %v2635_v2 = vpop.f32.mrb[0].mxu0 }
 0x300   : > { %v1588_v37 = vadd.f32 %v2635_v2, %v4132_v1  ;;  %v1582_v21 = vpop.f32.mrb[1].mxu0 }
 0x301   : > { %v1583_v3 = vadd.f32 %v4132_v1, %v1582_v21 }
 0x302   : > { %v2386_v4 = vmul.f32 -1.442695, %v1588_v37 }
 0x303   : > { %v2385_v6 = vmul.f32 -1.442695, %v1583_v3  ;;  %v2638_v17 = vpop.f32.mrb[2].mxu0 }
 0x304   : > { %3172 = vpow2.f32 %v2386_v4  ;;  %v1598_v25 = vadd.f32 %v2638_v17, %v4132_v1  ;;  %v1592_v8 = vpop.f32.mrb[3].mxu0 }
 0x305   : > { %3174 = vpow2.f32 %v2385_v6  ;;  %v1593_v9 = vadd.f32 %v4132_v1, %v1592_v8 }
 0x306   : > { %v2388_v11 = vmul.f32 -1.442695, %v1598_v25 }
 0x307   : > { %v2387_v20 = vmul.f32 -1.442695, %v1593_v9  ;;  %v2641_v57 = vpop.f32.mrb[4].mxu0 }
 0x308   : > { %3176 = vpow2.f32 %v2388_v11  ;;  %v1608_v31 = vadd.f32 %v2641_v57, %v4132_v1  ;;  %v1602_v13 = vpop.f32.mrb[5].mxu0 }
 0x309   : > { %3178 = vpow2.f32 %v2387_v20  ;;  %v1603_v15 = vadd.f32 %v4132_v1, %v1602_v13 }
 0x30a   : > { %v2390_v19 = vmul.f32 -1.442695, %v1608_v31 }
 0x30b   : > { %v2389_v42 = vmul.f32 -1.442695, %v1603_v15  ;;  %v2644_v7 = vpop.f32.mrb[6].mxu0 }
 0x30c   : > { %3180 = vpow2.f32 %v2390_v19  ;;  %v1618_v22 = vadd.f32 %v2644_v7, %v4132_v1  ;;  %v1612_v23 = vpop.f32.mrb[7].mxu0 }
 0x30d   : > { %3182 = vpow2.f32 %v2389_v42  ;;  %v1613_v18 = vadd.f32 %v4132_v1, %v1612_v23 }
 0x30e   : > { %v3173_v24 = vpop.eup %3172  ;;  %v2392_v26 = vmul.f32 -1.442695, %v1618_v22 }
 0x30f   : > { %v3175_v27 = vpop.eup %3174  ;;  %v1710_v28 = vadd.f32 1.0, %v3173_v24  ;;  %v2391_v52 = vmul.f32 -1.442695, %v1613_v18 }
 0x310   : > { %v1709_v54 = vadd.f32 1.0, %v3175_v27  ;;  %3184 = vpow2.f32 %v2392_v26  ;;  %v2647_v30 = vpop.f32.mrb[8].mxu0 }
 0x311   : > { %3186 = vrcp.f32 %v1710_v28  ;;  %v1628_v29 = vadd.f32 %v2647_v30, %v4132_v1  ;;  %v1622_v32 = vpop.f32.mrb[9].mxu0 }
 0x312   : > { %v3177_v33 = vpop.eup %3176  ;;  %3188 = vrcp.f32 %v1709_v54  ;;  %v1623_v10 = vadd.f32 %v4132_v1, %v1622_v32 }
 0x313   : > { %v3179_v34 = vpop.eup %3178  ;;  %v1712_v41 = vadd.f32 1.0, %v3177_v33  ;;  %3190 = vpow2.f32 %v2391_v52  ;;  %v2394_v12 = vmul.f32 -1.442695, %v1628_v29 }
 0x314   : > { %v1711_v14 = vadd.f32 1.0, %v3179_v34  ;;  %v2393_v35 = vmul.f32 -1.442695, %v1623_v10  ;;  %v2650_v45 = vpop.f32.mrb[10].mxu0  ;;  %v3591_v10 = vmov 0.0|0.0   ;;  %v3593_v34 = vmov 0.0  }
 0x315   : > { %3192 = vrcp.f32 %v1712_v41  ;;  %v1638_v36 = vadd.f32 %v2650_v45, %v4132_v1  ;;  %v1632_v38 = vpop.f32.mrb[11].mxu0  ;;  %2812 = vmatprep.subr.bf16.mxu0 %v3591_v10  ;;  %2745 = vmatprep.mubr.msk.f32.mxu0 %vm3592_vm0, %v3593_v34  ;;  %v4154_v41 = vld [vmem:[%s4289_s15] ss:$0 sm:$0xff] }
 0x316   : > { %v3181_v39 = vpop.eup %3180  ;;  %3194 = vrcp.f32 %v1711_v14  ;;  %v1633_v40 = vadd.f32 %v4132_v1, %v1632_v38 }
 0x317   : > { %v3183_v44 = vpop.eup %3182  ;;  %v1714_v48 = vadd.f32 1.0, %v3181_v39  ;;  %3196 = vpow2.f32 %v2394_v12  ;;  %v2396_v46 = vmul.f32 -1.442695, %v1638_v36 }
 0x318   : > { %v1713_v47 = vadd.f32 1.0, %v3183_v44  ;;  %3198 = vpow2.f32 %v2393_v35  ;;  %v2395_v49 = vmul.f32 -1.442695, %v1633_v40  ;;  %v2653_v43 = vpop.f32.mrb[12].mxu0 }
 0x319   : > { %3200 = vrcp.f32 %v1714_v48  ;;  %v1648_v51 = vadd.f32 %v2653_v43, %v4132_v1  ;;  %v1642_v50 = vpop.f32.mrb[13].mxu0 }
 0x31a   : > { %v3185_v5 = vpop.eup %3184  ;;  %3202 = vrcp.f32 %v1713_v47  ;;  %v1643_v53 = vadd.f32 %v4132_v1, %v1642_v50 }
 0x31b   : > { %v3187_v55 = vpop.eup %3186  ;;  %v1716_v56 = vadd.f32 1.0, %v3185_v5  ;;  %3204 = vpow2.f32 %v2396_v46  ;;  %v2398_v58 = vmul.f32 -1.442695, %v1648_v51 }
 0x31c   : > { %v3189_v60 = vpop.eup %3188  ;;  %3206 = vpow2.f32 %v2395_v49  ;;  %v2397_v61 = vmul.f32 -1.442695, %v1643_v53  ;;  %v2656_v59 = vpop.f32.mrb[14].mxu0 }
 0x31d   : > { %v3191_v62 = vpop.eup %3190  ;;  %3208 = vrcp.f32 %v1716_v56  ;;  %v1658_v63 = vadd.f32 %v2656_v59, %v4132_v1  ;;  %v1652_v16 = vpop.f32.mrb[15].mxu0  ;;  %2689 = vmatprep.mubr.f32.mxu1 %v3189_v60 }
 0x31e   : > { %v1715_v0 = vadd.f32 1.0, %v3191_v62  ;;  %3210 = vpow2.f32 %v2398_v58  ;;  %v1653_v2 = vadd.f32 %v4132_v1, %v1652_v16  ;;  %2690 = vmatmul.mubr.f32.vlgmr.msra.gmra.mrb[32].mxu1 %v3187_v55 }
 0x31f   : > { %v3193_v37 = vpop.eup %3192  ;;  %3212 = vpow2.f32 %v2397_v61  ;;  %v2400_v21 = vmul.f32 -1.442695, %v1658_v63 }
 0x320   : > { %v3195_v3 = vpop.eup %3194  ;;  %3214 = vrcp.f32 %v1715_v0  ;;  %v2399_v4 = vmul.f32 -1.442695, %v1653_v2 }
 0x321   : > { %v3197_v6 = vpop.eup %3196  ;;  %3216 = vpow2.f32 %v2400_v21  ;;  %2692 = vmatprep.mubr.f32.mxu1 %v3195_v3 }
 0x322   : > { %v3199_v17 = vpop.eup %3198  ;;  %v1718_v25 = vadd.f32 1.0, %v3197_v6  ;;  %3218 = vpow2.f32 %v2399_v4  ;;  %2693 = vmatmul.mubr.f32.gmra.mrb[34].mxu1 %v3193_v37 }
 0x323   : > { %v3201_v8 = vpop.eup %3200  ;;  %v1717_v9 = vadd.f32 1.0, %v3199_v17 }
 0x324   : > { %v3203_v11 = vpop.eup %3202 }
 0x325   : > { %v3205_v20 = vpop.eup %3204  ;;  %3220 = vrcp.f32 %v1717_v9  ;;  %2695 = vmatprep.mubr.f32.mxu1 %v3203_v11 }
 0x326   : > { %v3207_v1 = vpop.eup %3206  ;;  %3222 = vrcp.f32 %v1718_v25  ;;  %v1720_v57 = vadd.f32 1.0, %v3205_v20  ;;  %2696 = vmatmul.mubr.f32.gmra.mrb[36].mxu1 %v3201_v8 }
 0x327   : > { %v3209_v31 = vpop.eup %3208  ;;  %v1719_v13 = vadd.f32 1.0, %v3207_v1 }
 0x328   : > { %v3211_v15 = vpop.eup %3210 }
 0x329   : > { %v3213_v19 = vpop.eup %3212  ;;  %3224 = vrcp.f32 %v1719_v13  ;;  %v1722_v7 = vadd.f32 1.0, %v3211_v15 }
 0x32a   : > { %v3215_v42 = vpop.eup %3214  ;;  %3226 = vrcp.f32 %v1720_v57  ;;  %v1721_v22 = vadd.f32 1.0, %v3213_v19 }
 0x32b   : > { %v3217_v23 = vpop.eup %3216  ;;  %2698 = vmatprep.mubr.f32.mxu1 %v3215_v42 }
 0x32c   : > { %v3219_v18 = vpop.eup %3218  ;;  %3228 = vrcp.f32 %v1721_v22  ;;  %2699 = vmatmul.mubr.f32.gmra.mrb[38].mxu1 %v3209_v31  ;;  %v1724_v26 = vadd.f32 1.0, %v3217_v23 }
 0x32d   : > { %v1723_v24 = vadd.f32 1.0, %v3219_v18  ;;  %3230 = vrcp.f32 %v1722_v7 }
 0x32f   : > { %v3221_v27 = vpop.eup %3220  ;;  %3232 = vrcp.f32 %v1723_v24 }
 0x330   : > { %v3223_v28 = vpop.eup %3222  ;;  %2701 = vmatprep.mubr.f32.mxu1 %v3221_v27  ;;  %3234 = vrcp.f32 %v1724_v26 }
 0x331   : > { %2702 = vmatmul.mubr.f32.gmra.mrb[40].mxu1 %v3223_v28 }
 0x333   : > { %v3225_v52 = vpop.eup %3224 }
 0x334   : > { %v3227_v54 = vpop.eup %3226  ;;  %2704 = vmatprep.mubr.f32.mxu1 %v3225_v52 }
 0x335   : > { %2705 = vmatmul.mubr.f32.gmra.mrb[42].mxu1 %v3227_v54 }
 0x336   : > { %v3229_v30 = vpop.eup %3228 }
 0x337   : > { %2707 = vmatprep.mubr.f32.mxu1 %v3229_v30  ;;  %v3231_v29 = vpop.eup %3230 }
 0x339   : > { %v3233_v32 = vpop.eup %3232  ;;  %2708 = vmatmul.mubr.f32.gmra.mrb[44].mxu1 %v3231_v29 }
 0x33a   : > { %2710 = vmatprep.mubr.f32.mxu1 %v3233_v32  ;;  %v3235_v33 = vpop.eup %3234 }
 0x33d   : > { %2711 = vmatmul.mubr.f32.gmra.mrb[46].mxu1 %v3235_v33 }
 0x3f1   : > { %v2691_v12 = vpop.f32.mrb[32].mxu1 }
 0x3f2   : > { %v1852_v14 = vadd.f32 %v2691_v12, %v4154_v41  ;;  %v1846_v35 = vpop.f32.mrb[33].mxu1 }
 0x3f3   : > { %v1847_v45 = vadd.f32 %v4154_v41, %v1846_v35 }
 0x3f4   : > { %v2403_v36 = vmul.f32 -1.442695, %v1852_v14 }
 0x3f5   : > { %v2402_v38 = vmul.f32 -1.442695, %v1847_v45  ;;  %v2694_v39 = vpop.f32.mrb[34].mxu1 }
 0x3f6   : > { %3236 = vpow2.f32 %v2403_v36  ;;  %v1862_v40 = vadd.f32 %v2694_v39, %v4154_v41  ;;  %v1856_v44 = vpop.f32.mrb[35].mxu1 }
 0x3f7   : > { %3238 = vpow2.f32 %v2402_v38  ;;  %v1857_v48 = vadd.f32 %v4154_v41, %v1856_v44 }
 0x3f8   : > { %v2405_v46 = vmul.f32 -1.442695, %v1862_v40 }
 0x3f9   : > { %v2404_v47 = vmul.f32 -1.442695, %v1857_v48  ;;  %v2697_v49 = vpop.f32.mrb[36].mxu1 }
 0x3fa   : > { %3240 = vpow2.f32 %v2405_v46  ;;  %v1872_v43 = vadd.f32 %v2697_v49, %v4154_v41  ;;  %v1866_v51 = vpop.f32.mrb[37].mxu1 }
 0x3fb   : > { %3242 = vpow2.f32 %v2404_v47  ;;  %v1867_v50 = vadd.f32 %v4154_v41, %v1866_v51 }
 0x3fc   : > { %v2407_v5 = vmul.f32 -1.442695, %v1872_v43 }
 0x3fd   : > { %v2406_v53 = vmul.f32 -1.442695, %v1867_v50 }
 0x3fe   : > { %3244 = vpow2.f32 %v2407_v5 }
 0x3ff   : > { %3246 = vpow2.f32 %v2406_v53  ;;  %v2700_v55 = vpop.f32.mrb[38].mxu1 }
 0x400   : > { %v3237_v56 = vpop.eup %3236  ;;  %v1882_v58 = vadd.f32 %v2700_v55, %v4154_v41  ;;  %v1876_v60 = vpop.f32.mrb[39].mxu1 }
 0x401   : > { %v3239_v61 = vpop.eup %3238  ;;  %v1974_v59 = vadd.f32 1.0, %v3237_v56  ;;  %v1877_v62 = vadd.f32 %v4154_v41, %v1876_v60 }
 0x402   : > { %v1973_v63 = vadd.f32 1.0, %v3239_v61  ;;  %v2409_v16 = vmul.f32 -1.442695, %v1882_v58 }
 0x403   : > { %3248 = vrcp.f32 %v1974_v59  ;;  %v2408_v0 = vmul.f32 -1.442695, %v1877_v62 }
 0x404   : > { %v3241_v2 = vpop.eup %3240  ;;  %3250 = vrcp.f32 %v1973_v63  ;;  %v2703_v37 = vpop.f32.mrb[40].mxu1 }
 0x405   : > { %v3243_v21 = vpop.eup %3242  ;;  %v1976_v3 = vadd.f32 1.0, %v3241_v2  ;;  %3252 = vpow2.f32 %v2409_v16  ;;  %v1892_v4 = vadd.f32 %v2703_v37, %v4154_v41  ;;  %v1886_v6 = vpop.f32.mrb[41].mxu1 }
 0x406   : > { %v1975_v17 = vadd.f32 1.0, %v3243_v21  ;;  %3254 = vpow2.f32 %v2408_v0  ;;  %v1887_v25 = vadd.f32 %v4154_v41, %v1886_v6 }
 0x407   : > { %3256 = vrcp.f32 %v1976_v3  ;;  %v2411_v8 = vmul.f32 -1.442695, %v1892_v4 }
 0x408   : > { %v3245_v9 = vpop.eup %3244  ;;  %3258 = vrcp.f32 %v1975_v17  ;;  %v2410_v11 = vmul.f32 -1.442695, %v1887_v25  ;;  %v2706_v20 = vpop.f32.mrb[42].mxu1 }
 0x409   : > { %v3247_v1 = vpop.eup %3246  ;;  %v1978_v57 = vadd.f32 1.0, %v3245_v9  ;;  %3260 = vpow2.f32 %v2411_v8  ;;  %v1902_v31 = vadd.f32 %v2706_v20, %v4154_v41  ;;  %v1896_v13 = vpop.f32.mrb[43].mxu1 }
 0x40a   : > { %v1977_v15 = vadd.f32 1.0, %v3247_v1  ;;  %3262 = vpow2.f32 %v2410_v11  ;;  %v1897_v19 = vadd.f32 %v4154_v41, %v1896_v13 }
 0x40b   : > { %3264 = vrcp.f32 %v1978_v57  ;;  %v2413_v42 = vmul.f32 -1.442695, %v1902_v31  ;;  %v2021_v57 = vld [vmem:[%s4290_s10] sm:$0x1]  ;;  %v2022_v31 = vstv %s2303_s5 }
 0x40c   : > { %3266 = vrcp.f32 %v1977_v15  ;;  %v2412_v7 = vmul.f32 -1.442695, %v1897_v19  ;;  %v2709_v22 = vpop.f32.mrb[44].mxu1 }
 0x40d   : > { %v3249_v23 = vpop.eup %3248  ;;  %3268 = vpow2.f32 %v2413_v42  ;;  %v1912_v18 = vadd.f32 %v2709_v22, %v4154_v41  ;;  %v1906_v24 = vpop.f32.mrb[45].mxu1 }
 0x40e   : > { %v3251_v26 = vpop.eup %3250  ;;  %3270 = vpow2.f32 %v2412_v7  ;;  %v1907_v27 = vadd.f32 %v4154_v41, %v1906_v24 }
 0x40f   : > { %v3253_v28 = vpop.eup %3252  ;;  %v2415_v52 = vmul.f32 -1.442695, %v1912_v18  ;;  %v2813_v54 = vpack.c.bf16 %v3249_v23, %v3251_v26 }
 0x410   : > { %v3255_v30 = vpop.eup %3254  ;;  %v1980_v29 = vadd.f32 1.0, %v3253_v28  ;;  %v2414_v32 = vmul.f32 -1.442695, %v1907_v27  ;;  %v2712_v33 = vpop.f32.mrb[46].mxu1 }
 0x411   : > { %v3257_v34 = vpop.eup %3256  ;;  %v1979_v12 = vadd.f32 1.0, %v3255_v30  ;;  %3272 = vpow2.f32 %v2415_v52  ;;  %v1922_v14 = vadd.f32 %v2712_v33, %v4154_v41  ;;  %v1916_v35 = vpop.f32.mrb[47].mxu1  ;;  %2814 = vmatpush3.bf16.xpose.msra.mxu0 %v2813_v54 }
 0x412   : > { %v3259_v45 = vpop.eup %3258  ;;  %3274 = vrcp.f32 %v1980_v29  ;;  %v1917_v36 = vadd.f32 %v4154_v41, %v1916_v35  ;;  %2815 = vmatprep.subr.bf16.mxu0 %v3591_v10 }
 0x413   : > { %v3261_v38 = vpop.eup %3260  ;;  %3276 = vrcp.f32 %v1979_v12  ;;  %v2417_v39 = vmul.f32 -1.442695, %v1922_v14  ;;  %v2816_v40 = vpack.c.bf16 %v3257_v34, %v3259_v45 }
 0x414   : > { %v3263_v44 = vpop.eup %3262  ;;  %v1982_v48 = vadd.f32 1.0, %v3261_v38  ;;  %3278 = vpow2.f32 %v2414_v32  ;;  %v2416_v46 = vmul.f32 -1.442695, %v1917_v36 }
 0x415   : > { %v3265_v47 = vpop.eup %3264  ;;  %v1981_v49 = vadd.f32 1.0, %v3263_v44  ;;  %3280 = vpow2.f32 %v2417_v39 }
 0x416   : > { %v3267_v43 = vpop.eup %3266  ;;  %3282 = vrcp.f32 %v1982_v48 }
 0x417   : > { %v3269_v51 = vpop.eup %3268  ;;  %3284 = vrcp.f32 %v1981_v49  ;;  %v2819_v50 = vpack.c.bf16 %v3265_v47, %v3267_v43 }
 0x418   : > { %v3271_v5 = vpop.eup %3270  ;;  %v1984_v41 = vadd.f32 1.0, %v3269_v51  ;;  %3286 = vpow2.f32 %v2416_v46 }
 0x419   : > { %v1983_v53 = vadd.f32 1.0, %v3271_v5  ;;  %2817 = vmatpush3.bf16.xpose.msra.mxu0 %v2816_v40 }
 0x41a   : > { %3288 = vrcp.f32 %v1984_v41  ;;  %2818 = vmatprep.subr.bf16.mxu0 %v3591_v10 }
 0x41b   : > { %v3273_v55 = vpop.eup %3272  ;;  %3290 = vrcp.f32 %v1983_v53 }
 0x41c   : > { %v3275_v56 = vpop.eup %3274  ;;  %v1986_v58 = vadd.f32 1.0, %v3273_v55 }
 0x41d   : > { %v3277_v60 = vpop.eup %3276 }
 0x41e   : > { %v3279_v61 = vpop.eup %3278  ;;  %v2822_v59 = vpack.c.bf16 %v3275_v56, %v3277_v60  ;;  %3292 = vrcp.f32 %v1986_v58 }
 0x41f   : > { %v3281_v62 = vpop.eup %3280  ;;  %v1985_v63 = vadd.f32 1.0, %v3279_v61 }
 0x420   : > { %v3283_v16 = vpop.eup %3282  ;;  %v1988_v0 = vadd.f32 1.0, %v3281_v62 }
 0x421   : > { %v3285_v2 = vpop.eup %3284  ;;  %3294 = vrcp.f32 %v1985_v63  ;;  %2820 = vmatpush3.bf16.xpose.msra.mxu0 %v2819_v50 }
 0x422   : > { %v3287_v37 = vpop.eup %3286  ;;  %2821 = vmatprep.subr.bf16.mxu0 %v3591_v10  ;;  %v2825_v21 = vpack.c.bf16 %v3283_v16, %v3285_v2  ;;  %3296 = vrcp.f32 %v1988_v0 }
 0x423   : > { %v1987_v3 = vadd.f32 1.0, %v3287_v37 }
 0x424   : > { %v3289_v4 = vpop.eup %3288 }
 0x425   : > { %v3291_v6 = vpop.eup %3290  ;;  %3298 = vrcp.f32 %v1987_v3 }
 0x426   : > { %v2828_v17 = vpack.c.bf16 %v3289_v4, %v3291_v6 }
 0x428   : > { %v3293_v25 = vpop.eup %3292 }
 0x429   : > { %2823 = vmatpush3.bf16.xpose.msra.mxu0 %v2822_v59 }
 0x42a   : > { %2824 = vmatprep.subr.bf16.mxu0 %v3591_v10 }
 0x42b   : > { %v3295_v8 = vpop.eup %3294 }
 0x42c   : > { %v2831_v9 = vpack.c.bf16 %v3293_v25, %v3295_v8  ;;  %v3297_v11 = vpop.eup %3296 }
 0x42f   : > { %v3299_v20 = vpop.eup %3298 }
 0x430   : > { %v2834_v1 = vpack.c.bf16 %v3297_v11, %v3299_v20 }
 0x431   : > { %2826 = vmatpush3.bf16.xpose.msra.mxu0 %v2825_v21 }
 0x432   : > { %2827 = vmatprep.subr.bf16.mxu0 %v3591_v10 }
 0x439   : > { %2829 = vmatpush3.bf16.xpose.msra.mxu0 %v2828_v17 }
 0x43a   : > { %2830 = vmatprep.subr.bf16.mxu0 %v3591_v10 }
 0x441   : > { %2832 = vmatpush3.bf16.xpose.msra.mxu0 %v2831_v9 }
 0x442   : > { %2833 = vmatprep.subr.bf16.mxu0 %v3591_v10 }
 0x449   : > { %2835 = vmatpush3.bf16.xpose.msra.mxu0 %v2834_v1 }
 0x450   : > { %2746 = vmatmul.mubr.f32.vlgmr.msra.gmra.mrb[16].mxu0 %v2021_v57 }
 0x523   : > { %v2089_v13 = vpop.f32.mrb[16].mxu0 }
 0x524   : > { %v2090_v15 = vadd.f32 %v2089_v13, %v2022_v31  ;;  %v2747_v19 = vpop.f32.mrb[17].mxu0 }
 0x526   : > { %v2418_v42 = vmul.f32 -1.442695, %v2090_v15 }
 0x528   : > { %3300 = vpow2.f32 %v2418_v42 }
 0x532   : > { %v3301_v7 = vpop.eup %3300 }
 0x533   : > { %v2096_v22 = vadd.f32 1.0, %v3301_v7 }
 0x535   : > { %3302 = vrcp.f32 %v2096_v22 }
 0x53f   : > { %v3303_v10 = vpop.eup %3302 }
 0x540   : > { %2099 = vst [vmem:[%s574_s7] sm:$0x1] %v3303_v10 }
 0x541   : > { %3504 = shalt.err (!%p3501_p5)
}
 0x542   : > { %s3505_s23 = scalar_lea.hbm %s4187_s12, 16  ;;  %s3509_s1 = scalar_lea.hbm %s4291_s20, 32 }
 0x543   : > { %p3506_p1 = scmp.ne.s32.totalorder %s4187_s12, %s3505_s23  ;;  %p3510_p10 = scmp.lt.u32.totalorder %s4187_s12, %s4291_s20 }
 0x544   : > { %p3511_p6 = scmp.lt.u32.totalorder %s3509_s1, %s3505_s23  ;;  %p3513_p2 = scmp.lt.u32.totalorder %s3505_s23, %s4187_s12 }
 0x545   : > { %p3507_p9 = pnand %p3506_p1, %p4292_p11 }
 0x546   : > { %p3512_p12 = por %p3511_p6, %p3510_p10 }
 0x547   : > { %p3508_p4 = pneg %p3507_p9 }
 0x548   : > { %p3514_p13 = por %p3513_p2, %p3512_p12 }
 0x54a   : > { %p3515_p0 = pnand %p3514_p13, %p3508_p4 }
 0x54c   : > { %3518 = shalt.err (!%p3515_p0)
}
 0x54d   : > { %2860 = dma.vmem_to_hbm [thread:$0]  (%p4292_p11), %s4189_s18, 16, %s4187_s12, %s2101_s6  }
 0x54e PF: > { %s2125_s13 = sand.u32 1, %s3565_s21   ;;  %p4293_p8 = scmp.ne.s32.totalorder %s4275_s14, 0 }
 0x54f   : > { %p4294_p3 = scmp.ge.s32.totalorder %s3577_s24, 2  ;;  %s2126_s28 = scalar_lea.sflag [#allocation4], %s2125_s13 }
 0x551   : > { %p2886_p7 = pnand %p4294_p3, %p4293_p8 }
 0x553   : > { %3560 = dma.done.wait (!%p2886_p7), %s2126_s28, 16  }
 0x554   : > { %3562 = vsyncadd (!%p2886_p7), %s2126_s28, 4294967280  ;;  %s4295_s10 = sld [smem:[#allocation23_spill]]  ;;  %s4296_s23 = sld [smem:[#allocation24_spill]] }
 0x555   : > { %p31_p5 = scmp.ge.s32.totalorder %s3813_s16, 4   ;;  %s4297_s21 = smov %s3569_s22 }
 0x556   : > { %s4299_s24 = smov %s3813_s16 }
 0x557   :  { %33 = sbr.rel (!%p31_p5) target bundleno = 20 (0x14), region = 153 }
 0x55a   : > { %s4298_s22 = smov %s4295_s10 }
 0x55e   :  { %2130 = vsyncpa [#allocation3], 1 }
 0x55f   :  { %2132 = vsyncpa [#allocation3 + $0x1], 1 }
 0x560   :  { %2133 = vsyncpa [#allocation8], 1 }
 0x561   :  { %2135 = vsyncpa [#allocation8 + $0x1], 1 }
 0x562   :  { %2136 = vsyncpa [#allocation11], 1 }
 0x563   :  { %2137 = vsyncpa [#allocation14], 1 }
 0x564   :  { %2138 = vsyncpa [#allocation4], 1 }
 0x565   :  { %2140 = vsyncpa [#allocation4 + $0x1], 1 }
 0x566   :  { %2141 = vsyncpa [#allocation5], 1 }
 0x567   :  { %2143 = vsyncpa [#allocation5 + $0x1], 1 }

</bundles_post_ra>
